<compile_context>
chip_gen: v7x
topology: tpu7x:2x2x1
jax: 0.10.0
libtpu: 0.0.40
codegen_flags: <defaults>
</compile_context>

<pallas_src>
import functools

import jax
import jax.numpy as jnp
from jax import lax
from jax.experimental import pallas as pl
from jax.experimental.pallas import tpu as pltpu


def _round_up(a, b):
    return ((a + b - 1) // b) * b


def _pick_head_group(heads, dim_head, lane_target=128):
    """Smallest g with heads % g == 0 and g*dim_head a multiple of
    `lane_target` lanes.  Falls back to a single group (= full inner dim,
    which is always a legal BlockSpec)."""
    for g in range(1, heads + 1):
        if heads % g == 0 and (g * dim_head) % lane_target == 0:
            return g
    return heads


# ---------------------------------------------------------------------------
# Fused kernel: q/k/v projection + online-softmax attention + output Linear
# ---------------------------------------------------------------------------
def _cross_attention_kernel(
    x_ref, c_ref, wq_ref, wk_ref, wv_ref, wo_ref, bo_ref,   # inputs
    o_ref,                                                  # output
    q_scr, m_scr, l_scr, acc_scr, out_scr,                  # VMEM scratch
    *, g, dim_head, tkv, kv_len, mask_kv):
    hg = pl.program_id(1)            # head-group index (arbitrary / reduce)
    ki = pl.program_id(2)            # kv-tile index    (arbitrary / reduce)
    last_hg = pl.num_programs(1) - 1
    last_ki = pl.num_programs(2) - 1

    # --- init fused-output accumulator once per query tile ------------------
    @pl.when(jnp.logical_and(hg == 0, ki == 0))
    def _():
        out_scr[...] = jnp.zeros(out_scr.shape, jnp.float32)

    # --- per (query tile, head group): project q, reset flash state ---------
    @pl.when(ki == 0)
    def _():
        # softmax scale is folded into wq by prepare_cross_attention_params()
        q_scr[...] = jnp.dot(x_ref[...], wq_ref[...],
                             preferred_element_type=jnp.float32)
        m_scr[...] = jnp.full(m_scr.shape, -jnp.inf, jnp.float32)
        l_scr[...] = jnp.zeros(l_scr.shape, jnp.float32)
        acc_scr[...] = jnp.zeros(acc_scr.shape, jnp.float32)

    # --- k/v projection for this kv tile and head group (lane-dense g*d) ----
    c = c_ref[...]
    k = jnp.dot(c, wk_ref[...], preferred_element_type=jnp.float32)
    v = jnp.dot(c, wv_ref[...],
                preferred_element_type=jnp.float32).astype(c.dtype)

    if mask_kv:
        kv_pos = ki * tkv + lax.broadcasted_iota(jnp.int32, (1, tkv), 1)
        kv_valid = kv_pos < kv_len                        # (1, tkv)

    # --- per-head online softmax (g is small and static) --------------------
    for h in range(g):
        dsl = pl.ds(h * dim_head, dim_head)
        q_h = q_scr[:, dsl]                               # (tq, d)  f32
        k_h = k[:, h * dim_head:(h + 1) * dim_head]       # (tkv, d) f32
        v_h = v[:, h * dim_head:(h + 1) * dim_head]       # (tkv, d) in dtype
        # q @ k^T with the transpose absorbed into the contraction dims.
        s = lax.dot_general(q_h, k_h, (((1,), (1,)), ((), ())),
                            preferred_element_type=jnp.float32)   # (tq, tkv)
        if mask_kv:
            s = jnp.where(kv_valid, s, -1e30)

        hsl = pl.ds(h, 1)
        m_prev = m_scr[:, hsl]                            # (tq, 1)
        m_new = jnp.maximum(m_prev, jnp.max(s, axis=-1, keepdims=True))
        alpha = jnp.exp(m_prev - m_new)
        p = jnp.exp(s - m_new)                            # (tq, tkv)
        l_scr[:, hsl] = alpha * l_scr[:, hsl] + jnp.sum(p, -1, keepdims=True)
        acc_scr[:, dsl] = alpha * acc_scr[:, dsl] + jnp.dot(
            p.astype(v_h.dtype), v_h, preferred_element_type=jnp.float32)
        m_scr[:, hsl] = m_new

    # --- after the last kv tile: normalise, fuse the output Linear ----------
    @pl.when(ki == last_ki)
    def _():
        for h in range(g):
            dsl = pl.ds(h * dim_head, dim_head)
            inv_l = pl.reciprocal(l_scr[:, pl.ds(h, 1)], approx=True)
            acc_scr[:, dsl] = acc_scr[:, dsl] * inv_l
        wo = wo_ref[...]                                  # (g*d, Dq)
        out_scr[...] += jnp.dot(acc_scr[...].astype(wo.dtype), wo,
                                preferred_element_type=jnp.float32)

    @pl.when(jnp.logical_and(hg == last_hg, ki == last_ki))
    def _():
        o_ref[...] = (out_scr[...] + bo_ref[...]).astype(o_ref.dtype)


# ---------------------------------------------------------------------------
# One-time parameter preparation (NOT per-forward)
# ---------------------------------------------------------------------------
def prepare_cross_attention_params(raw_params, *, dim_head):
    """Fold softmax scale into Wq and make the output bias 2-D.  Weights are
    [in_features, out_features]."""
    scale = dim_head ** (-0.5)
    return {
        "wq": raw_params["wq"] * scale,
        "wk": raw_params["wk"],
        "wv": raw_params["wv"],
        "wo": raw_params["wo"],
        "bo": jnp.asarray(raw_params["bo"]).reshape(1, -1),
    }


# ---------------------------------------------------------------------------
# Wrapper
# ---------------------------------------------------------------------------
def cross_attention(x, context, params, *, heads, dim_head, mask=None,
                    block_q=256, block_kv=512, lane_target=128):
    """x: [N, query_dim]; context: [M, context_dim] or None (self-attention).
    `params` must come from prepare_cross_attention_params().  Returns
    [N, query_dim]."""
    assert mask is None, "TODO(synk): mask path not implemented"
    if context is None:
        context = x

    N, Dq = x.shape
    M, Dc = context.shape
    inner = heads * dim_head
    if params["wq"].shape != (Dq, inner):
        raise ValueError(f"wq shape {params['wq'].shape} != {(Dq, inner)}")
    if params["wk"].shape != (Dc, inner):
        raise ValueError(
            "context feature dim does not match to_k/to_v weights: "
            f"wk is {params['wk'].shape} but context has {Dc} features")

    g = _pick_head_group(heads, dim_head, lane_target)
    gd = g * dim_head

    tq = min(_round_up(block_q, 8), _round_up(N, 8))
    tkv = min(_round_up(block_kv, 8), _round_up(M, 8))
    n_pad = _round_up(N, tq)
    m_pad = _round_up(M, tkv)

    x_p = x if n_pad == N else jnp.pad(x, ((0, n_pad - N), (0, 0)))
    c_p = context if m_pad == M else jnp.pad(context, ((0, m_pad - M), (0, 0)))

    kernel = functools.partial(
        _cross_attention_kernel, g=g, dim_head=dim_head, tkv=tkv,
        kv_len=M, mask_kv=(m_pad != M))

    out = pl.pallas_call(
        kernel,
        out_shape=jax.ShapeDtypeStruct((n_pad, Dq), x.dtype),
        grid_spec=pltpu.PrefetchScalarGridSpec(
            num_scalar_prefetch=0,
            grid=(n_pad // tq, heads // g, m_pad // tkv),
            in_specs=[
                pl.BlockSpec((tq, Dq), lambda ni, hg, ki: (ni, 0)),    # x
                pl.BlockSpec((tkv, Dc), lambda ni, hg, ki: (ki, 0)),   # context
                pl.BlockSpec((Dq, gd), lambda ni, hg, ki: (0, hg)),    # wq
                pl.BlockSpec((Dc, gd), lambda ni, hg, ki: (0, hg)),    # wk
                pl.BlockSpec((Dc, gd), lambda ni, hg, ki: (0, hg)),    # wv
                pl.BlockSpec((gd, Dq), lambda ni, hg, ki: (hg, 0)),    # wo
                pl.BlockSpec((1, Dq), lambda ni, hg, ki: (0, 0)),      # bias
            ],
            out_specs=pl.BlockSpec((tq, Dq), lambda ni, hg, ki: (ni, 0)),
            scratch_shapes=[
                pltpu.VMEM((tq, gd), jnp.float32),   # q for this head group
                pltpu.VMEM((tq, g), jnp.float32),    # running max per head
                pltpu.VMEM((tq, g), jnp.float32),    # running denom per head
                pltpu.VMEM((tq, gd), jnp.float32),   # unnormalised attn @ v
                pltpu.VMEM((tq, Dq), jnp.float32),   # fused output accumulator
            ]),
        compiler_params=pltpu.CompilerParams(
            dimension_semantics=("parallel", "arbitrary", "arbitrary")),
    )(x_p, c_p, params["wq"], params["wk"], params["wv"],
      params["wo"], params["bo"])

    return out[:N] if n_pad != N else out


# ---------------------------------------------------------------------------
# Pure-JAX reference (mirrors the PyTorch forward exactly)
# ---------------------------------------------------------------------------
def cross_attention_ref(x, context, raw_params, *, heads, dim_head):
    if context is None:
        context = x
    N = x.shape[0]
    scale = dim_head ** (-0.5)
    q = x @ raw_params["wq"]
    k = context @ raw_params["wk"]
    v = context @ raw_params["wv"]

    def split(t):
        return t.reshape(t.shape[0], heads, dim_head).transpose(1, 0, 2)

    q, k, v = split(q), split(k), split(v)
    sim = jnp.einsum("hid,hjd->hij", q, k) * scale
    attn = jax.nn.softmax(sim, axis=-1)
    out = jnp.einsum("hij,hjd->hid", attn, v)
    out = out.transpose(1, 0, 2).reshape(N, heads * dim_head)
    return out @ raw_params["wo"] + raw_params["bo"].reshape(1, -1)


if __name__ == "__main__":
    key = jax.random.PRNGKey(0)
    ks = jax.random.split(key, 18)

    # ---- config 1: cross-attention, context_dim != query_dim --------------
    query_dim, context_dim = 32, 24
    heads, dim_head = 4, 16
    inner = heads * dim_head
    N, M = 16, 8

    x = jax.random.normal(ks[0], (N, query_dim), jnp.float32)
    ctx = jax.random.normal(ks[1], (M, context_dim), jnp.float32)

    raw = {
        "wq": jax.random.normal(ks[2], (query_dim, inner), jnp.float32) * 0.05,
        "wk": jax.random.normal(ks[3], (context_dim, inner), jnp.float32) * 0.05,
        "wv": jax.random.normal(ks[4], (context_dim, inner), jnp.float32) * 0.05,
        "wo": jax.random.normal(ks[5], (inner, query_dim), jnp.float32) * 0.05,
        "bo": jax.random.normal(ks[6], (query_dim,), jnp.float32) * 0.05,
    }
    params = prepare_cross_attention_params(raw, dim_head=dim_head)

    out = jax.block_until_ready(
        cross_attention(x, ctx, params, heads=heads, dim_head=dim_head))
    ref = cross_attention_ref(x, ctx, raw, heads=heads, dim_head=dim_head)
    assert out.shape == (N, query_dim)
    err = float(jnp.max(jnp.abs(out - ref)))
    assert err < 2e-3, f"cross-attention mismatch: {err}"

    # ---- config 2: self-attention (context=None) ---------------------------
    # In PyTorch, context_dim defaults to query_dim, so to_k/to_v take
    # query_dim-sized inputs when used for self-attention.
    raw_self = {
        "wq": raw["wq"],
        "wk": jax.random.normal(ks[7], (query_dim, inner), jnp.float32) * 0.05,
        "wv": jax.random.normal(ks[8], (query_dim, inner), jnp.float32) * 0.05,
        "wo": raw["wo"],
        "bo": raw["bo"],
    }
    params_self = prepare_cross_attention_params(raw_self, dim_head=dim_head)
    out_self = jax.block_until_ready(
        cross_attention(x, None, params_self, heads=heads, dim_head=dim_head))
    ref_self = cross_attention_ref(x, None, raw_self,
                                   heads=heads, dim_head=dim_head)
    err = float(jnp.max(jnp.abs(out_self - ref_self)))
    assert err < 2e-3, f"self-attention mismatch: {err}"

    # ---- config 3: ragged lengths + multiple query/kv tiles ----------------
    x3 = jax.random.normal(ks[9], (20, query_dim), jnp.float32)
    ctx3 = jax.random.normal(ks[10], (10, context_dim), jnp.float32)
    out3 = jax.block_until_ready(
        cross_attention(x3, ctx3, params, heads=heads, dim_head=dim_head,
                        block_q=8, block_kv=8))
    ref3 = cross_attention_ref(x3, ctx3, raw, heads=heads, dim_head=dim_head)
    err = float(jnp.max(jnp.abs(out3 - ref3)))
    assert err < 2e-3, f"ragged/tiled mismatch: {err}"

    # ---- config 4: multiple head groups (accumulated output projection) ----
    q4, h4, d4 = 64, 2, 128
    inner4 = h4 * d4
    x4 = jax.random.normal(ks[11], (16, q4), jnp.float32)
    ctx4 = jax.random.normal(ks[12], (16, q4), jnp.float32)
    raw4 = {
        "wq": jax.random.normal(ks[13], (q4, inner4), jnp.float32) * 0.05,
        "wk": jax.random.normal(ks[14], (q4, inner4), jnp.float32) * 0.05,
        "wv": jax.random.normal(ks[15], (q4, inner4), jnp.float32) * 0.05,
        "wo": jax.random.normal(ks[16], (inner4, q4), jnp.float32) * 0.05,
        "bo": jax.random.normal(ks[17], (q4,), jnp.float32) * 0.05,
    }
    params4 = prepare_cross_attention_params(raw4, dim_head=d4)
    out4 = jax.block_until_ready(
        cross_attention(x4, ctx4, params4, heads=h4, dim_head=d4))
    ref4 = cross_attention_ref(x4, ctx4, raw4, heads=h4, dim_head=d4)
    err = float(jnp.max(jnp.abs(out4 - ref4)))
    assert err < 2e-3, f"multi-head-group mismatch: {err}"

    print("KERNEL_OK")
</pallas_src>

<mosaic_0001>
module attributes {stable_mosaic.version = 11 : i64} {
  func.func @_cross_attention_kernel(%arg0: i32, %arg1: i32, %arg2: i32, %arg3: memref<16x32xf32, #tpu.memory_space<vmem>>, %arg4: memref<8x24xf32, #tpu.memory_space<vmem>>, %arg5: memref<32x64xf32, #tpu.memory_space<vmem>>, %arg6: memref<24x64xf32, #tpu.memory_space<vmem>>, %arg7: memref<24x64xf32, #tpu.memory_space<vmem>>, %arg8: memref<64x32xf32, #tpu.memory_space<vmem>>, %arg9: memref<1x32xf32, #tpu.memory_space<vmem>>, %arg10: memref<16x32xf32, #tpu.memory_space<vmem>>, %arg11: memref<16x64xf32, #tpu.memory_space<vmem>>, %arg12: memref<16x4xf32, #tpu.memory_space<vmem>>, %arg13: memref<16x4xf32, #tpu.memory_space<vmem>>, %arg14: memref<16x64xf32, #tpu.memory_space<vmem>>, %arg15: memref<16x32xf32, #tpu.memory_space<vmem>>) attributes {dimension_semantics = [#tpu.dimension_semantics<parallel>, #tpu.dimension_semantics<arbitrary>, #tpu.dimension_semantics<arbitrary>], iteration_bounds = array<i64: 1, 1, 1>, scalar_prefetch = 0 : i64, scratch_operands = 5 : i64, tpu.core_type = #tpu.core_type<tc>, window_params = [{transform_indices = @transform_0, window_bounds = array<i64: 16, 32>}, {transform_indices = @transform_1, window_bounds = array<i64: 8, 24>}, {transform_indices = @transform_2, window_bounds = array<i64: 32, 64>}, {transform_indices = @transform_3, window_bounds = array<i64: 24, 64>}, {transform_indices = @transform_4, window_bounds = array<i64: 24, 64>}, {transform_indices = @transform_5, window_bounds = array<i64: 64, 32>}, {pipeline_mode = #tpu.pipeline_mode<synchronous>, transform_indices = @transform_6, window_bounds = array<i64: 1, 32>}, {transform_indices = @transform_7, window_bounds = array<i64: 16, 32>}]} {
    %c0_i32 = arith.constant 0 : i32
    %0 = arith.cmpi eq, %arg1, %c0_i32 : i32
    %c0_i32_0 = arith.constant 0 : i32
    %1 = arith.cmpi eq, %arg2, %c0_i32_0 : i32
    %2 = arith.andi %0, %1 : i1
    %3 = arith.extui %2 : i1 to i32
    %c0_i32_1 = arith.constant 0 : i32
    %4 = arith.cmpi ne, %3, %c0_i32_1 : i32
    scf.if %4 {
      %cst_81 = arith.constant 0.000000e+00 : f32
      %125 = vector.broadcast %cst_81 : f32 to vector<16x32xf32>
      %c0_82 = arith.constant 0 : index
      %c0_83 = arith.constant 0 : index
      %126 = vector.load %arg15[%c0_82, %c0_83] : memref<16x32xf32, #tpu.memory_space<vmem>>, vector<16x32xf32>
      tpu.vector_store %arg15[%c0_82, %c0_83], %125 {strides = array<i32>} : memref<16x32xf32, #tpu.memory_space<vmem>>, vector<16x32xf32>,
    } else {
    }
    %c0_i32_2 = arith.constant 0 : i32
    %5 = arith.cmpi eq, %arg2, %c0_i32_2 : i32
    %6 = arith.extui %5 : i1 to i32
    %c0_i32_3 = arith.constant 0 : i32
    %7 = arith.cmpi ne, %6, %c0_i32_3 : i32
    scf.if %7 {
      %c0_81 = arith.constant 0 : index
      %c0_82 = arith.constant 0 : index
      %125 = vector.load %arg3[%c0_81, %c0_82] : memref<16x32xf32, #tpu.memory_space<vmem>>, vector<16x32xf32>
      %c0_83 = arith.constant 0 : index
      %c0_84 = arith.constant 0 : index
      %126 = vector.load %arg5[%c0_83, %c0_84] : memref<32x64xf32, #tpu.memory_space<vmem>>, vector<32x64xf32>
      %cst_85 = arith.constant dense<0.000000e+00> : vector<16x64xf32>
      %127 = tpu.matmul %125, %126, %cst_85 {dimension_numbers = #tpu.dot_dimension_numbers<[1], [0], [0], [1], [0, 0, 1, 1], [], []>} : vector<16x32xf32>, vector<32x64xf32>, vector<16x64xf32> -> vector<16x64xf32>
      %c0_86 = arith.constant 0 : index
      %c0_87 = arith.constant 0 : index
      %128 = vector.load %arg11[%c0_86, %c0_87] : memref<16x64xf32, #tpu.memory_space<vmem>>, vector<16x64xf32>
      tpu.vector_store %arg11[%c0_86, %c0_87], %127 {strides = array<i32>} : memref<16x64xf32, #tpu.memory_space<vmem>>, vector<16x64xf32>,
      %cst_88 = arith.constant 0xFF800000 : f32
      %129 = vector.broadcast %cst_88 : f32 to vector<16x4xf32>
      %c0_89 = arith.constant 0 : index
      %c0_90 = arith.constant 0 : index
      %130 = vector.load %arg12[%c0_89, %c0_90] : memref<16x4xf32, #tpu.memory_space<vmem>>, vector<16x4xf32>
      tpu.vector_store %arg12[%c0_89, %c0_90], %129 {strides = array<i32>} : memref<16x4xf32, #tpu.memory_space<vmem>>, vector<16x4xf32>,
      %cst_91 = arith.constant 0.000000e+00 : f32
      %131 = vector.broadcast %cst_91 : f32 to vector<16x4xf32>
      %c0_92 = arith.constant 0 : index
      %c0_93 = arith.constant 0 : index
      %132 = vector.load %arg13[%c0_92, %c0_93] : memref<16x4xf32, #tpu.memory_space<vmem>>, vector<16x4xf32>
      tpu.vector_store %arg13[%c0_92, %c0_93], %131 {strides = array<i32>} : memref<16x4xf32, #tpu.memory_space<vmem>>, vector<16x4xf32>,
      %cst_94 = arith.constant 0.000000e+00 : f32
      %133 = vector.broadcast %cst_94 : f32 to vector<16x64xf32>
      %c0_95 = arith.constant 0 : index
      %c0_96 = arith.constant 0 : index
      %134 = vector.load %arg14[%c0_95, %c0_96] : memref<16x64xf32, #tpu.memory_space<vmem>>, vector<16x64xf32>
      tpu.vector_store %arg14[%c0_95, %c0_96], %133 {strides = array<i32>} : memref<16x64xf32, #tpu.memory_space<vmem>>, vector<16x64xf32>,
    } else {
    }
    %c0 = arith.constant 0 : index
    %c0_4 = arith.constant 0 : index
    %8 = vector.load %arg4[%c0, %c0_4] : memref<8x24xf32, #tpu.memory_space<vmem>>, vector<8x24xf32>
    %c0_5 = arith.constant 0 : index
    %c0_6 = arith.constant 0 : index
    %9 = vector.load %arg6[%c0_5, %c0_6] : memref<24x64xf32, #tpu.memory_space<vmem>>, vector<24x64xf32>
    %cst = arith.constant dense<0.000000e+00> : vector<8x64xf32>
    %10 = tpu.matmul %8, %9, %cst {dimension_numbers = #tpu.dot_dimension_numbers<[1], [0], [0], [1], [0, 0, 1, 1], [], []>} : vector<8x24xf32>, vector<24x64xf32>, vector<8x64xf32> -> vector<8x64xf32>
    %c0_7 = arith.constant 0 : index
    %c0_8 = arith.constant 0 : index
    %11 = vector.load %arg7[%c0_7, %c0_8] : memref<24x64xf32, #tpu.memory_space<vmem>>, vector<24x64xf32>
    %cst_9 = arith.constant dense<0.000000e+00> : vector<8x64xf32>
    %12 = tpu.matmul %8, %11, %cst_9 {dimension_numbers = #tpu.dot_dimension_numbers<[1], [0], [0], [1], [0, 0, 1, 1], [], []>} : vector<8x24xf32>, vector<24x64xf32>, vector<8x64xf32> -> vector<8x64xf32>
    %c0_10 = arith.constant 0 : index
    %c0_11 = arith.constant 0 : index
    %13 = vector.load %arg11[%c0_10, %c0_11] : memref<16x64xf32, #tpu.memory_space<vmem>>, vector<16x16xf32>
    %14 = vector.extract_strided_slice %10 {offsets = [0, 0], sizes = [8, 16], strides = [1, 1]} : vector<8x64xf32> to vector<8x16xf32>
    %15 = vector.extract_strided_slice %12 {offsets = [0, 0], sizes = [8, 16], strides = [1, 1]} : vector<8x64xf32> to vector<8x16xf32>
    %cst_12 = arith.constant dense<0.000000e+00> : vector<16x8xf32>
    %16 = tpu.matmul %13, %14, %cst_12 {dimension_numbers = #tpu.dot_dimension_numbers<[1], [1], [0], [0], [0, 0, 1, 0], [], []>} : vector<16x16xf32>, vector<8x16xf32>, vector<16x8xf32> -> vector<16x8xf32>
    %c0_13 = arith.constant 0 : index
    %c0_14 = arith.constant 0 : index
    %17 = vector.load %arg12[%c0_13, %c0_14] : memref<16x4xf32, #tpu.memory_space<vmem>>, vector<16x1xf32>
    %cst_15 = arith.constant dense<0xFF800000> : vector<16xf32>
    %18 = vector.multi_reduction <maximumf>, %16, %cst_15 [1] : vector<16x8xf32> to vector<16xf32>
    %19 = vector.shape_cast %18 : vector<16xf32> to vector<16x1xf32>
    %20 = arith.maximumf %17, %19 : vector<16x1xf32>
    %21 = arith.subf %17, %20 : vector<16x1xf32>
    %22 = math.exp %21 : vector<16x1xf32>
    %23 = vector.broadcast %20 : vector<16x1xf32> to vector<16x8xf32>
    %24 = arith.subf %16, %23 : vector<16x8xf32>
    %25 = math.exp %24 : vector<16x8xf32>
    %c0_16 = arith.constant 0 : index
    %c0_17 = arith.constant 0 : index
    %26 = vector.load %arg13[%c0_16, %c0_17] : memref<16x4xf32, #tpu.memory_space<vmem>>, vector<16x1xf32>
    %27 = arith.mulf %22, %26 : vector<16x1xf32>
    %cst_18 = arith.constant dense<0.000000e+00> : vector<16xf32>
    %28 = vector.multi_reduction <add>, %25, %cst_18 [1] : vector<16x8xf32> to vector<16xf32>
    %29 = vector.shape_cast %28 : vector<16xf32> to vector<16x1xf32>
    %30 = arith.addf %27, %29 : vector<16x1xf32>
    %c0_19 = arith.constant 0 : index
    %c0_20 = arith.constant 0 : index
    %31 = vector.load %arg13[%c0_19, %c0_20] : memref<16x4xf32, #tpu.memory_space<vmem>>, vector<16x1xf32>
    tpu.vector_store %arg13[%c0_19, %c0_20], %30 {strides = array<i32>} : memref<16x4xf32, #tpu.memory_space<vmem>>, vector<16x1xf32>,
    %c0_21 = arith.constant 0 : index
    %c0_22 = arith.constant 0 : index
    %32 = vector.load %arg14[%c0_21, %c0_22] : memref<16x64xf32, #tpu.memory_space<vmem>>, vector<16x16xf32>
    %33 = vector.broadcast %22 : vector<16x1xf32> to vector<16x16xf32>
    %34 = arith.mulf %33, %32 : vector<16x16xf32>
    %cst_23 = arith.constant dense<0.000000e+00> : vector<16x16xf32>
    %35 = tpu.matmul %25, %15, %cst_23 {dimension_numbers = #tpu.dot_dimension_numbers<[1], [0], [0], [1], [0, 0, 1, 1], [], []>} : vector<16x8xf32>, vector<8x16xf32>, vector<16x16xf32> -> vector<16x16xf32>
    %36 = arith.addf %34, %35 : vector<16x16xf32>
    %c0_24 = arith.constant 0 : index
    %c0_25 = arith.constant 0 : index
    %37 = vector.load %arg14[%c0_24, %c0_25] : memref<16x64xf32, #tpu.memory_space<vmem>>, vector<16x16xf32>
    tpu.vector_store %arg14[%c0_24, %c0_25], %36 {strides = array<i32>} : memref<16x64xf32, #tpu.memory_space<vmem>>, vector<16x16xf32>,
    %c0_26 = arith.constant 0 : index
    %c0_27 = arith.constant 0 : index
    %38 = vector.load %arg12[%c0_26, %c0_27] : memref<16x4xf32, #tpu.memory_space<vmem>>, vector<16x1xf32>
    tpu.vector_store %arg12[%c0_26, %c0_27], %20 {strides = array<i32>} : memref<16x4xf32, #tpu.memory_space<vmem>>, vector<16x1xf32>,
    %c0_28 = arith.constant 0 : index
    %c16 = arith.constant 16 : index
    %39 = vector.load %arg11[%c0_28, %c16] : memref<16x64xf32, #tpu.memory_space<vmem>>, vector<16x16xf32>
    %40 = vector.extract_strided_slice %10 {offsets = [0, 16], sizes = [8, 16], strides = [1, 1]} : vector<8x64xf32> to vector<8x16xf32>
    %41 = vector.extract_strided_slice %12 {offsets = [0, 16], sizes = [8, 16], strides = [1, 1]} : vector<8x64xf32> to vector<8x16xf32>
    %cst_29 = arith.constant dense<0.000000e+00> : vector<16x8xf32>
    %42 = tpu.matmul %39, %40, %cst_29 {dimension_numbers = #tpu.dot_dimension_numbers<[1], [1], [0], [0], [0, 0, 1, 0], [], []>} : vector<16x16xf32>, vector<8x16xf32>, vector<16x8xf32> -> vector<16x8xf32>
    %c0_30 = arith.constant 0 : index
    %c1 = arith.constant 1 : index
    %43 = vector.load %arg12[%c0_30, %c1] : memref<16x4xf32, #tpu.memory_space<vmem>>, vector<16x1xf32>
    %cst_31 = arith.constant dense<0xFF800000> : vector<16xf32>
    %44 = vector.multi_reduction <maximumf>, %42, %cst_31 [1] : vector<16x8xf32> to vector<16xf32>
    %45 = vector.shape_cast %44 : vector<16xf32> to vector<16x1xf32>
    %46 = arith.maximumf %43, %45 : vector<16x1xf32>
    %47 = arith.subf %43, %46 : vector<16x1xf32>
    %48 = math.exp %47 : vector<16x1xf32>
    %49 = vector.broadcast %46 : vector<16x1xf32> to vector<16x8xf32>
    %50 = arith.subf %42, %49 : vector<16x8xf32>
    %51 = math.exp %50 : vector<16x8xf32>
    %c0_32 = arith.constant 0 : index
    %c1_33 = arith.constant 1 : index
    %52 = vector.load %arg13[%c0_32, %c1_33] : memref<16x4xf32, #tpu.memory_space<vmem>>, vector<16x1xf32>
    %53 = arith.mulf %48, %52 : vector<16x1xf32>
    %cst_34 = arith.constant dense<0.000000e+00> : vector<16xf32>
    %54 = vector.multi_reduction <add>, %51, %cst_34 [1] : vector<16x8xf32> to vector<16xf32>
    %55 = vector.shape_cast %54 : vector<16xf32> to vector<16x1xf32>
    %56 = arith.addf %53, %55 : vector<16x1xf32>
    %c0_35 = arith.constant 0 : index
    %c1_36 = arith.constant 1 : index
    %57 = vector.load %arg13[%c0_35, %c1_36] : memref<16x4xf32, #tpu.memory_space<vmem>>, vector<16x1xf32>
    tpu.vector_store %arg13[%c0_35, %c1_36], %56 {strides = array<i32>} : memref<16x4xf32, #tpu.memory_space<vmem>>, vector<16x1xf32>,
    %c0_37 = arith.constant 0 : index
    %c16_38 = arith.constant 16 : index
    %58 = vector.load %arg14[%c0_37, %c16_38] : memref<16x64xf32, #tpu.memory_space<vmem>>, vector<16x16xf32>
    %59 = vector.broadcast %48 : vector<16x1xf32> to vector<16x16xf32>
    %60 = arith.mulf %59, %58 : vector<16x16xf32>
    %cst_39 = arith.constant dense<0.000000e+00> : vector<16x16xf32>
    %61 = tpu.matmul %51, %41, %cst_39 {dimension_numbers = #tpu.dot_dimension_numbers<[1], [0], [0], [1], [0, 0, 1, 1], [], []>} : vector<16x8xf32>, vector<8x16xf32>, vector<16x16xf32> -> vector<16x16xf32>
    %62 = arith.addf %60, %61 : vector<16x16xf32>
    %c0_40 = arith.constant 0 : index
    %c16_41 = arith.constant 16 : index
    %63 = vector.load %arg14[%c0_40, %c16_41] : memref<16x64xf32, #tpu.memory_space<vmem>>, vector<16x16xf32>
    tpu.vector_store %arg14[%c0_40, %c16_41], %62 {strides = array<i32>} : memref<16x64xf32, #tpu.memory_space<vmem>>, vector<16x16xf32>,
    %c0_42 = arith.constant 0 : index
    %c1_43 = arith.constant 1 : index
    %64 = vector.load %arg12[%c0_42, %c1_43] : memref<16x4xf32, #tpu.memory_space<vmem>>, vector<16x1xf32>
    tpu.vector_store %arg12[%c0_42, %c1_43], %46 {strides = array<i32>} : memref<16x4xf32, #tpu.memory_space<vmem>>, vector<16x1xf32>,
    %c0_44 = arith.constant 0 : index
    %c32 = arith.constant 32 : index
    %65 = vector.load %arg11[%c0_44, %c32] : memref<16x64xf32, #tpu.memory_space<vmem>>, vector<16x16xf32>
    %66 = vector.extract_strided_slice %10 {offsets = [0, 32], sizes = [8, 16], strides = [1, 1]} : vector<8x64xf32> to vector<8x16xf32>
    %67 = vector.extract_strided_slice %12 {offsets = [0, 32], sizes = [8, 16], strides = [1, 1]} : vector<8x64xf32> to vector<8x16xf32>
    %cst_45 = arith.constant dense<0.000000e+00> : vector<16x8xf32>
    %68 = tpu.matmul %65, %66, %cst_45 {dimension_numbers = #tpu.dot_dimension_numbers<[1], [1], [0], [0], [0, 0, 1, 0], [], []>} : vector<16x16xf32>, vector<8x16xf32>, vector<16x8xf32> -> vector<16x8xf32>
    %c0_46 = arith.constant 0 : index
    %c2 = arith.constant 2 : index
    %69 = vector.load %arg12[%c0_46, %c2] : memref<16x4xf32, #tpu.memory_space<vmem>>, vector<16x1xf32>
    %cst_47 = arith.constant dense<0xFF800000> : vector<16xf32>
    %70 = vector.multi_reduction <maximumf>, %68, %cst_47 [1] : vector<16x8xf32> to vector<16xf32>
    %71 = vector.shape_cast %70 : vector<16xf32> to vector<16x1xf32>
    %72 = arith.maximumf %69, %71 : vector<16x1xf32>
    %73 = arith.subf %69, %72 : vector<16x1xf32>
    %74 = math.exp %73 : vector<16x1xf32>
    %75 = vector.broadcast %72 : vector<16x1xf32> to vector<16x8xf32>
    %76 = arith.subf %68, %75 : vector<16x8xf32>
    %77 = math.exp %76 : vector<16x8xf32>
    %c0_48 = arith.constant 0 : index
    %c2_49 = arith.constant 2 : index
    %78 = vector.load %arg13[%c0_48, %c2_49] : memref<16x4xf32, #tpu.memory_space<vmem>>, vector<16x1xf32>
    %79 = arith.mulf %74, %78 : vector<16x1xf32>
    %cst_50 = arith.constant dense<0.000000e+00> : vector<16xf32>
    %80 = vector.multi_reduction <add>, %77, %cst_50 [1] : vector<16x8xf32> to vector<16xf32>
    %81 = vector.shape_cast %80 : vector<16xf32> to vector<16x1xf32>
    %82 = arith.addf %79, %81 : vector<16x1xf32>
    %c0_51 = arith.constant 0 : index
    %c2_52 = arith.constant 2 : index
    %83 = vector.load %arg13[%c0_51, %c2_52] : memref<16x4xf32, #tpu.memory_space<vmem>>, vector<16x1xf32>
    tpu.vector_store %arg13[%c0_51, %c2_52], %82 {strides = array<i32>} : memref<16x4xf32, #tpu.memory_space<vmem>>, vector<16x1xf32>,
    %c0_53 = arith.constant 0 : index
    %c32_54 = arith.constant 32 : index
    %84 = vector.load %arg14[%c0_53, %c32_54] : memref<16x64xf32, #tpu.memory_space<vmem>>, vector<16x16xf32>
    %85 = vector.broadcast %74 : vector<16x1xf32> to vector<16x16xf32>
    %86 = arith.mulf %85, %84 : vector<16x16xf32>
    %cst_55 = arith.constant dense<0.000000e+00> : vector<16x16xf32>
    %87 = tpu.matmul %77, %67, %cst_55 {dimension_numbers = #tpu.dot_dimension_numbers<[1], [0], [0], [1], [0, 0, 1, 1], [], []>} : vector<16x8xf32>, vector<8x16xf32>, vector<16x16xf32> -> vector<16x16xf32>
    %88 = arith.addf %86, %87 : vector<16x16xf32>
    %c0_56 = arith.constant 0 : index
    %c32_57 = arith.constant 32 : index
    %89 = vector.load %arg14[%c0_56, %c32_57] : memref<16x64xf32, #tpu.memory_space<vmem>>, vector<16x16xf32>
    tpu.vector_store %arg14[%c0_56, %c32_57], %88 {strides = array<i32>} : memref<16x64xf32, #tpu.memory_space<vmem>>, vector<16x16xf32>,
    %c0_58 = arith.constant 0 : index
    %c2_59 = arith.constant 2 : index
    %90 = vector.load %arg12[%c0_58, %c2_59] : memref<16x4xf32, #tpu.memory_space<vmem>>, vector<16x1xf32>
    tpu.vector_store %arg12[%c0_58, %c2_59], %72 {strides = array<i32>} : memref<16x4xf32, #tpu.memory_space<vmem>>, vector<16x1xf32>,
    %c0_60 = arith.constant 0 : index
    %c48 = arith.constant 48 : index
    %91 = vector.load %arg11[%c0_60, %c48] : memref<16x64xf32, #tpu.memory_space<vmem>>, vector<16x16xf32>
    %92 = vector.extract_strided_slice %10 {offsets = [0, 48], sizes = [8, 16], strides = [1, 1]} : vector<8x64xf32> to vector<8x16xf32>
    %93 = vector.extract_strided_slice %12 {offsets = [0, 48], sizes = [8, 16], strides = [1, 1]} : vector<8x64xf32> to vector<8x16xf32>
    %cst_61 = arith.constant dense<0.000000e+00> : vector<16x8xf32>
    %94 = tpu.matmul %91, %92, %cst_61 {dimension_numbers = #tpu.dot_dimension_numbers<[1], [1], [0], [0], [0, 0, 1, 0], [], []>} : vector<16x16xf32>, vector<8x16xf32>, vector<16x8xf32> -> vector<16x8xf32>
    %c0_62 = arith.constant 0 : index
    %c3 = arith.constant 3 : index
    %95 = vector.load %arg12[%c0_62, %c3] : memref<16x4xf32, #tpu.memory_space<vmem>>, vector<16x1xf32>
    %cst_63 = arith.constant dense<0xFF800000> : vector<16xf32>
    %96 = vector.multi_reduction <maximumf>, %94, %cst_63 [1] : vector<16x8xf32> to vector<16xf32>
    %97 = vector.shape_cast %96 : vector<16xf32> to vector<16x1xf32>
    %98 = arith.maximumf %95, %97 : vector<16x1xf32>
    %99 = arith.subf %95, %98 : vector<16x1xf32>
    %100 = math.exp %99 : vector<16x1xf32>
    %101 = vector.broadcast %98 : vector<16x1xf32> to vector<16x8xf32>
    %102 = arith.subf %94, %101 : vector<16x8xf32>
    %103 = math.exp %102 : vector<16x8xf32>
    %c0_64 = arith.constant 0 : index
    %c3_65 = arith.constant 3 : index
    %104 = vector.load %arg13[%c0_64, %c3_65] : memref<16x4xf32, #tpu.memory_space<vmem>>, vector<16x1xf32>
    %105 = arith.mulf %100, %104 : vector<16x1xf32>
    %cst_66 = arith.constant dense<0.000000e+00> : vector<16xf32>
    %106 = vector.multi_reduction <add>, %103, %cst_66 [1] : vector<16x8xf32> to vector<16xf32>
    %107 = vector.shape_cast %106 : vector<16xf32> to vector<16x1xf32>
    %108 = arith.addf %105, %107 : vector<16x1xf32>
    %c0_67 = arith.constant 0 : index
    %c3_68 = arith.constant 3 : index
    %109 = vector.load %arg13[%c0_67, %c3_68] : memref<16x4xf32, #tpu.memory_space<vmem>>, vector<16x1xf32>
    tpu.vector_store %arg13[%c0_67, %c3_68], %108 {strides = array<i32>} : memref<16x4xf32, #tpu.memory_space<vmem>>, vector<16x1xf32>,
    %c0_69 = arith.constant 0 : index
    %c48_70 = arith.constant 48 : index
    %110 = vector.load %arg14[%c0_69, %c48_70] : memref<16x64xf32, #tpu.memory_space<vmem>>, vector<16x16xf32>
    %111 = vector.broadcast %100 : vector<16x1xf32> to vector<16x16xf32>
    %112 = arith.mulf %111, %110 : vector<16x16xf32>
    %cst_71 = arith.constant dense<0.000000e+00> : vector<16x16xf32>
    %113 = tpu.matmul %103, %93, %cst_71 {dimension_numbers = #tpu.dot_dimension_numbers<[1], [0], [0], [1], [0, 0, 1, 1], [], []>} : vector<16x8xf32>, vector<8x16xf32>, vector<16x16xf32> -> vector<16x16xf32>
    %114 = arith.addf %112, %113 : vector<16x16xf32>
    %c0_72 = arith.constant 0 : index
    %c48_73 = arith.constant 48 : index
    %115 = vector.load %arg14[%c0_72, %c48_73] : memref<16x64xf32, #tpu.memory_space<vmem>>, vector<16x16xf32>
    tpu.vector_store %arg14[%c0_72, %c48_73], %114 {strides = array<i32>} : memref<16x64xf32, #tpu.memory_space<vmem>>, vector<16x16xf32>,
    %c0_74 = arith.constant 0 : index
    %c3_75 = arith.constant 3 : index
    %116 = vector.load %arg12[%c0_74, %c3_75] : memref<16x4xf32, #tpu.memory_space<vmem>>, vector<16x1xf32>
    tpu.vector_store %arg12[%c0_74, %c3_75], %98 {strides = array<i32>} : memref<16x4xf32, #tpu.memory_space<vmem>>, vector<16x1xf32>,
    %c0_i32_76 = arith.constant 0 : i32
    %117 = arith.cmpi eq, %arg2, %c0_i32_76 : i32
    %118 = arith.extui %117 : i1 to i32
    %c0_i32_77 = arith.constant 0 : i32
    %119 = arith.cmpi ne, %118, %c0_i32_77 : i32
    scf.if %119 {
      %c0_81 = arith.constant 0 : index
      %c0_82 = arith.constant 0 : index
      %125 = vector.load %arg13[%c0_81, %c0_82] : memref<16x4xf32, #tpu.memory_space<vmem>>, vector<16x1xf32>
      %126 = tpu.reciprocal %125 {approx = true} : vector<16x1xf32> -> vector<16x1xf32>
      %c0_83 = arith.constant 0 : index
      %c0_84 = arith.constant 0 : index
      %127 = vector.load %arg14[%c0_83, %c0_84] : memref<16x64xf32, #tpu.memory_space<vmem>>, vector<16x16xf32>
      %128 = vector.broadcast %126 : vector<16x1xf32> to vector<16x16xf32>
      %129 = arith.mulf %127, %128 : vector<16x16xf32>
      %c0_85 = arith.constant 0 : index
      %c0_86 = arith.constant 0 : index
      %130 = vector.load %arg14[%c0_85, %c0_86] : memref<16x64xf32, #tpu.memory_space<vmem>>, vector<16x16xf32>
      tpu.vector_store %arg14[%c0_85, %c0_86], %129 {strides = array<i32>} : memref<16x64xf32, #tpu.memory_space<vmem>>, vector<16x16xf32>,
      %c0_87 = arith.constant 0 : index
      %c1_88 = arith.constant 1 : index
      %131 = vector.load %arg13[%c0_87, %c1_88] : memref<16x4xf32, #tpu.memory_space<vmem>>, vector<16x1xf32>
      %132 = tpu.reciprocal %131 {approx = true} : vector<16x1xf32> -> vector<16x1xf32>
      %c0_89 = arith.constant 0 : index
      %c16_90 = arith.constant 16 : index
      %133 = vector.load %arg14[%c0_89, %c16_90] : memref<16x64xf32, #tpu.memory_space<vmem>>, vector<16x16xf32>
      %134 = vector.broadcast %132 : vector<16x1xf32> to vector<16x16xf32>
      %135 = arith.mulf %133, %134 : vector<16x16xf32>
      %c0_91 = arith.constant 0 : index
      %c16_92 = arith.constant 16 : index
      %136 = vector.load %arg14[%c0_91, %c16_92] : memref<16x64xf32, #tpu.memory_space<vmem>>, vector<16x16xf32>
      tpu.vector_store %arg14[%c0_91, %c16_92], %135 {strides = array<i32>} : memref<16x64xf32, #tpu.memory_space<vmem>>, vector<16x16xf32>,
      %c0_93 = arith.constant 0 : index
      %c2_94 = arith.constant 2 : index
      %137 = vector.load %arg13[%c0_93, %c2_94] : memref<16x4xf32, #tpu.memory_space<vmem>>, vector<16x1xf32>
      %138 = tpu.reciprocal %137 {approx = true} : vector<16x1xf32> -> vector<16x1xf32>
      %c0_95 = arith.constant 0 : index
      %c32_96 = arith.constant 32 : index
      %139 = vector.load %arg14[%c0_95, %c32_96] : memref<16x64xf32, #tpu.memory_space<vmem>>, vector<16x16xf32>
      %140 = vector.broadcast %138 : vector<16x1xf32> to vector<16x16xf32>
      %141 = arith.mulf %139, %140 : vector<16x16xf32>
      %c0_97 = arith.constant 0 : index
      %c32_98 = arith.constant 32 : index
      %142 = vector.load %arg14[%c0_97, %c32_98] : memref<16x64xf32, #tpu.memory_space<vmem>>, vector<16x16xf32>
      tpu.vector_store %arg14[%c0_97, %c32_98], %141 {strides = array<i32>} : memref<16x64xf32, #tpu.memory_space<vmem>>, vector<16x16xf32>,
      %c0_99 = arith.constant 0 : index
      %c3_100 = arith.constant 3 : index
      %143 = vector.load %arg13[%c0_99, %c3_100] : memref<16x4xf32, #tpu.memory_space<vmem>>, vector<16x1xf32>
      %144 = tpu.reciprocal %143 {approx = true} : vector<16x1xf32> -> vector<16x1xf32>
      %c0_101 = arith.constant 0 : index
      %c48_102 = arith.constant 48 : index
      %145 = vector.load %arg14[%c0_101, %c48_102] : memref<16x64xf32, #tpu.memory_space<vmem>>, vector<16x16xf32>
      %146 = vector.broadcast %144 : vector<16x1xf32> to vector<16x16xf32>
      %147 = arith.mulf %145, %146 : vector<16x16xf32>
      %c0_103 = arith.constant 0 : index
      %c48_104 = arith.constant 48 : index
      %148 = vector.load %arg14[%c0_103, %c48_104] : memref<16x64xf32, #tpu.memory_space<vmem>>, vector<16x16xf32>
      tpu.vector_store %arg14[%c0_103, %c48_104], %147 {strides = array<i32>} : memref<16x64xf32, #tpu.memory_space<vmem>>, vector<16x16xf32>,
      %c0_105 = arith.constant 0 : index
      %c0_106 = arith.constant 0 : index
      %149 = vector.load %arg8[%c0_105, %c0_106] : memref<64x32xf32, #tpu.memory_space<vmem>>, vector<64x32xf32>
      %c0_107 = arith.constant 0 : index
      %c0_108 = arith.constant 0 : index
      %150 = vector.load %arg15[%c0_107, %c0_108] : memref<16x32xf32, #tpu.memory_space<vmem>>, vector<16x32xf32>
      %c0_109 = arith.constant 0 : index
      %c0_110 = arith.constant 0 : index
      %151 = vector.load %arg14[%c0_109, %c0_110] : memref<16x64xf32, #tpu.memory_space<vmem>>, vector<16x64xf32>
      %cst_111 = arith.constant dense<0.000000e+00> : vector<16x32xf32>
      %152 = tpu.matmul %151, %149, %cst_111 {dimension_numbers = #tpu.dot_dimension_numbers<[1], [0], [0], [1], [0, 0, 1, 1], [], []>} : vector<16x64xf32>, vector<64x32xf32>, vector<16x32xf32> -> vector<16x32xf32>
      %153 = arith.addf %150, %152 : vector<16x32xf32>
      %c0_112 = arith.constant 0 : index
      %c0_113 = arith.constant 0 : index
      %154 = vector.load %arg15[%c0_112, %c0_113] : memref<16x32xf32, #tpu.memory_space<vmem>>, vector<16x32xf32>
      tpu.vector_store %arg15[%c0_112, %c0_113], %153 {strides = array<i32>} : memref<16x32xf32, #tpu.memory_space<vmem>>, vector<16x32xf32>,
    } else {
    }
    %c0_i32_78 = arith.constant 0 : i32
    %120 = arith.cmpi eq, %arg1, %c0_i32_78 : i32
    %c0_i32_79 = arith.constant 0 : i32
    %121 = arith.cmpi eq, %arg2, %c0_i32_79 : i32
    %122 = arith.andi %120, %121 : i1
    %123 = arith.extui %122 : i1 to i32
    %c0_i32_80 = arith.constant 0 : i32
    %124 = arith.cmpi ne, %123, %c0_i32_80 : i32
    scf.if %124 {
      %c0_81 = arith.constant 0 : index
      %c0_82 = arith.constant 0 : index
      %125 = vector.load %arg15[%c0_81, %c0_82] : memref<16x32xf32, #tpu.memory_space<vmem>>, vector<16x32xf32>
      %c0_83 = arith.constant 0 : index
      %c0_84 = arith.constant 0 : index
      %126 = vector.load %arg9[%c0_83, %c0_84] : memref<1x32xf32, #tpu.memory_space<vmem>>, vector<1x32xf32>
      %127 = vector.broadcast %126 : vector<1x32xf32> to vector<16x32xf32>
      %128 = arith.addf %125, %127 : vector<16x32xf32>
      %c0_85 = arith.constant 0 : index
      %c0_86 = arith.constant 0 : index
      %129 = vector.load %arg10[%c0_85, %c0_86] : memref<16x32xf32, #tpu.memory_space<vmem>>, vector<16x32xf32>
      tpu.vector_store %arg10[%c0_85, %c0_86], %128 {strides = array<i32>} : memref<16x32xf32, #tpu.memory_space<vmem>>, vector<16x32xf32>,
    } else {
    }
    return
  }
  func.func @transform_0(%arg0: i32, %arg1: i32, %arg2: i32) -> (i32, i32) {
    %c0_i32 = arith.constant 0 : i32
    %c0_i32_0 = arith.constant 0 : i32
    return %arg0, %c0_i32 : i32, i32
  }
  func.func @transform_1(%arg0: i32, %arg1: i32, %arg2: i32) -> (i32, i32) {
    %c0_i32 = arith.constant 0 : i32
    %c0_i32_0 = arith.constant 0 : i32
    return %arg2, %c0_i32 : i32, i32
  }
  func.func @transform_2(%arg0: i32, %arg1: i32, %arg2: i32) -> (i32, i32) {
    %c0_i32 = arith.constant 0 : i32
    %c0_i32_0 = arith.constant 0 : i32
    return %c0_i32, %arg1 : i32, i32
  }
  func.func @transform_3(%arg0: i32, %arg1: i32, %arg2: i32) -> (i32, i32) {
    %c0_i32 = arith.constant 0 : i32
    %c0_i32_0 = arith.constant 0 : i32
    return %c0_i32, %arg1 : i32, i32
  }
  func.func @transform_4(%arg0: i32, %arg1: i32, %arg2: i32) -> (i32, i32) {
    %c0_i32 = arith.constant 0 : i32
    %c0_i32_0 = arith.constant 0 : i32
    return %c0_i32, %arg1 : i32, i32
  }
  func.func @transform_5(%arg0: i32, %arg1: i32, %arg2: i32) -> (i32, i32) {
    %c0_i32 = arith.constant 0 : i32
    %c0_i32_0 = arith.constant 0 : i32
    return %arg1, %c0_i32 : i32, i32
  }
  func.func @transform_6(%arg0: i32, %arg1: i32, %arg2: i32) -> (i32, i32) {
    %c0_i32 = arith.constant 0 : i32
    %c0_i32_0 = arith.constant 0 : i32
    %c0_i32_1 = arith.constant 0 : i32
    return %c0_i32, %c0_i32_0 : i32, i32
  }
  func.func @transform_7(%arg0: i32, %arg1: i32, %arg2: i32) -> (i32, i32) {
    %c0_i32 = arith.constant 0 : i32
    %c0_i32_0 = arith.constant 0 : i32
    return %arg0, %c0_i32 : i32, i32
  }
}

</mosaic_0001>

<bundles_post_ra>
// kernel: tpu_custom_call.1
= control target key start
LH: loop header
LB: loop body
LE: loop exit
PB: predicated region body
PF: predicated region fallthrough
CT: control target
= control target key end

     0   :  { %12 = vsyncpa [#allocation8], 0  ;;  %s2226_s0 = inlined_call_operand.vmem [shape: f32[16,32], index: 0, kind: input, shape index: {}]   ;;  %s2227_s1 = inlined_call_operand.hbm [shape: f32[8,24], index: 1, kind: input, shape index: {}]   ;;  %s2228_s2 = inlined_call_operand.vmem [shape: f32[32,64], index: 2, kind: input, shape index: {}]   ;;  %s2229_s3 = inlined_call_operand.vmem [shape: f32[24,64], index: 3, kind: input, shape index: {}]   ;;  %s2230_s4 = inlined_call_operand.vmem [shape: f32[24,64], index: 4, kind: input, shape index: {}]   ;;  %s2231_s5 = inlined_call_operand.vmem [shape: f32[64,32], index: 5, kind: input, shape index: {}]   ;;  %s2232_s6 = inlined_call_operand.vmem [shape: f32[1,32], index: 6, kind: input, shape index: {}]   ;;  %s2233_s7 = inlined_call_operand.hbm [shape: f32[16,32], index: 7, kind: output, shape index: {}]  }
   0x1   :  { %13 = vsyncpa [#allocation9], 0  ;;  %s1818_s24 = smov [#allocation7]   ;;  %s1770_s28 = scalar_lea.hbm %s2227_s1, 128 }
   0x2   :  { %s22_s25 = sshll.u32 %s1818_s24, 4  ;;  %p1771_p0 = scmp.ne.s32.totalorder %s2227_s1, %s1770_s28  ;;  %s23_s25 = int_to_ptr.vmem [resolvable:$true] %s22_s25 }
   0x3   :  { %p1774_p1 = scmp.lt.u32.totalorder %s1770_s28, %s2227_s1 }
   0x5   :  { %p1776_p2 = pnand %p1774_p1, %p1771_p0 }
   0x7   :  { %1779 = shalt.err (!%p1776_p2)
}
   0x8   :  { %s1780_s10 = scalar_lea.vmem %s23_s25, 128  ;;  %p1785_p4 = scmp.lt.s32.totalorder %s23_s25, %s23_s25 }
   0x9   :  { %p1781_p3 = scmp.ne.s32.totalorder %s23_s25, %s1780_s10  ;;  %p1786_p5 = scmp.lt.s32.totalorder %s1780_s10, %s1780_s10 }
   0xb   :  { %p1787_p6 = por %p1786_p5, %p1785_p4 }
   0xd   :  { %p1788_p7 = pnand %p1787_p6, %p1781_p3 }
   0xf   :  { %1791 = shalt.err (!%p1788_p7)
}
  0x10   :  { %25 = dma.hbm_to_vmem [thread:$0]  %s2227_s1, 128, %s23_s25, [#allocation8]  }
  0x11   :  { %1814 = dma.done.wait [#allocation8], 128  }
  0x12   :  { %1815 = vsyncadd [#allocation8], 4294967168  ;;  %vm45_vm0 = vcmask 261120   ;;  %v1819_v0 = vmov 0.0   ;;  %v1820_v1 = vmov 0.0|0.0   ;;  %vm1821_vm1 = vmmov 0  }
  0x13   :  { %46 = vst.msk [vmem:[#allocation6] sm:$0xff] %vm45_vm0, %v1819_v0  ;;  %47 = vst.msk [vmem:[#allocation6 + $0x8] sm:$0xff] %vm45_vm0, %v1819_v0  ;;  %1679 = vmatprep.subr.bf16.mxu1 %v1820_v1  ;;  %1606 = vmatprep.mubr.msk.f32.mxu1 %vm1821_vm1, %v1819_v0  ;;  %v53_v2 = vld [vmem:[%s2228_s2] sm:$0xff]  ;;  %v54_v3 = vld [vmem:[%s2228_s2 + $0x8] sm:$0xff]  ;;  %vm153_vm2 = vcmask 195584   ;;  %vm139_vm3 = vcmask 523264  }
  0x14   :  { %v55_v4 = vld [vmem:[%s2228_s2 + $0x10] sm:$0xff]  ;;  %v1668_v5 = vpack.c.bf16 %v54_v3, %v53_v2  ;;  %v56_v6 = vld [vmem:[%s2228_s2 + $0x18] sm:$0xff]  ;;  %v51_v7 = vld [vmem:[%s2226_s0] sm:$0xff]  ;;  %147 = vst.msk [vmem:[#allocation5] sm:$0xff] %vm139_vm3, %v1819_v0  ;;  %vm302_vm4 = vcmask 130048   ;;  %s1822_s10 = smov 112  }
  0x15   :  { %v1672_v8 = vpack.c.bf16 %v56_v6, %v55_v4  ;;  %1588 = vmatprep.mubr.msk.f32.mxu0 %vm45_vm0, %v51_v7  ;;  %v150_v9 = vld [vmem:[%s2229_s3] sm:$0xff]  ;;  %v151_v10 = vld [vmem:[%s2229_s3 + $0x8] sm:$0xff]  ;;  %v152_v13 = vld [vmem:[%s2229_s3 + $0x10] sm:$0xff]  ;;  %148 = vst.msk [vmem:[#allocation5 + $0x8] sm:$0xff] %vm139_vm3, %v1819_v0  ;;  %s1824_s11 = smov 80   ;;  %vm389_vm5 = vcmask 64512  }
  0x16   :  { %1669 = vmatprep.subr.bf16.mxu0 %v1668_v5  ;;  %v52_v11 = vld [vmem:[%s2226_s0 + $0x8] sm:$0xff]  ;;  %v1677_v12 = vpack.c.bf16 %v151_v10, %v150_v9  ;;  %v149_v14 = vld [vmem:[#allocation7] sm:$0xff]  ;;  %v227_v15 = vld [vmem:[%s2230_s4] sm:$0xff]  ;;  %vm142_vm6 = vcmask 31744   ;;  %v1825_v40 = vmov -inf   ;;  %v1826_v41 = vmov 0  }
  0x17   :  { %1671 = vmatpush3.bf16.msra.mxu0 %v1668_v5  ;;  %v228_v16 = vld [vmem:[%s2230_s4 + $0x8] sm:$0xff]  ;;  %v229_v18 = vld [vmem:[%s2230_s4 + $0x10] sm:$0xff]  ;;  %s1823_s4 = smov 96   ;;  %144 = vst.msk [vmem:[#allocation3 + $0x8] sm:$0xff] %vm142_vm6, %v1825_v40  ;;  %143 = vst.msk [vmem:[#allocation3] sm:$0xff] %vm142_vm6, %v1825_v40  ;;  %1717 = vset.pattern.permute.xlu1 %v1826_v41  ;;  %vm432_vm7 = vcmask 7168  }
  0x18   :  { %1673 = vmatprep.subr.bf16.mxu0 %v1672_v8  ;;  %v1680_v17 = vpack.c.bf16 %v228_v16, %v227_v15  ;;  %145 = vst.msk [vmem:[#allocation4] sm:$0xff] %vm142_vm6, %v1819_v0  ;;  %146 = vst.msk [vmem:[#allocation4 + $0x8] sm:$0xff] %vm142_vm6, %v1819_v0  ;;  %1716 = vset.pattern.permute.xlu0 %v1826_v41  ;;  %v1827_v62 = vmov 1   ;;  %vm671_vm8 = vcmask 15368   ;;  %vm923_vm9 = vcmask 23568   ;;  %s1830_s12 = smov 16  }
  0x19   :  { %vm1174_vm10 = vcmask 31768   ;;  %s1831_s13 = smov 32   ;;  %s1832_s14 = smov 48   ;;  %vm783_vm11 = vcmask 261248   ;;  %vm1034_vm12 = vcmask 392448   ;;  %vm1285_vm13 = vcmask 523648  }
  0x1a   :  { %1681 = vmatpush3.bf16.msra.mxu1 %v1680_v17  ;;  %s1833_s29 = smov [#allocation10]  }
  0x1b   :  { %1675 = vmatpush3.bf16.msra.mxu0 %v1672_v8  ;;  %1604 = vmatprep.subr.mxu1 %v1819_v0  ;;  %s1493_s30 = sshll.u32 %s1833_s29, 4  ;;  %s1494_s30 = int_to_ptr.vmem [resolvable:$true] %s1493_s30 }
  0x1c   :  { %1676 = vmatprep.subr.bf16.mxu0 %v1820_v1  ;;  %s1792_s8 = scalar_lea.vmem %s1494_s30, 256  ;;  %p1797_p9 = scmp.lt.s32.totalorder %s1494_s30, %s1494_s30 }
  0x1d   :  { %p1793_p8 = scmp.ne.s32.totalorder %s1494_s30, %s1792_s8  ;;  %p1798_p10 = scmp.lt.s32.totalorder %s1792_s8, %s1792_s8 }
  0x1e   :  { %1589 = vmatmul.mubr.msk.f32.vlgmr.msra.gmra.mrb[0].mxu0 %vm45_vm0, %v52_v11  ;;  %1605 = vmatpush3.msra.mxu1 %v229_v18  ;;  %v2007_v54 = vld [vmem:[#allocation3 + $0x8] sm:$0xff]  ;;  %v2009_v55 = vld [vmem:[#allocation3] sm:$0xff] }
  0x1f   :  { %1678 = vmatpush3.bf16.msra.mxu0 %v1677_v12  ;;  %1597 = vmatprep.mubr.msk.f32.mxu0 %vm1821_vm1, %v1819_v0  ;;  %p1799_p11 = por %p1798_p10, %p1797_p9 }
  0x20   :  { %1595 = vmatprep.subr.mxu0 %v1819_v0  ;;  %1607 = vmatmul.mubr.msk.f32.vlgmr.msra.gmra.mrb[0].mxu1 %vm153_vm2, %v149_v14 }
  0x21   :  { %p1800_p12 = pnand %p1799_p11, %p1793_p8 }
  0x23   :  { %1596 = vmatpush3.msra.mxu0 %v152_v13 }
  0x24   :  { %1598 = vmatmul.mubr.msk.f32.vlgmr.msra.gmra.mrb[2].mxu0 %vm153_vm2, %v149_v14  ;;  %v1828_v14 = vmov 2  }
  0xf1   :  { %v1590_v19 = vpop.f32.mrb[0].mxu0 }
  0xf2   :  { %141 = vst.msk [vmem:[#allocation2 + $0x8] sm:$0xff] %vm139_vm3, %v1590_v19  ;;  %v130_v20 = vpop.f32.mrb[1].mxu0 }
  0xf3   :  { %140 = vst.msk [vmem:[#allocation2] sm:$0xff] %vm139_vm3, %v130_v20  ;;  %v1955_v25 = vpop.f32.mrb[0].mxu1 }
  0xf4   :  { %v1608_v26 = vpop.f32.mrb[1].mxu1 }
  0xf7   :  { %v223_v21 = vpop.f32.mrb[2].mxu0 }
  0xf8   :  { %544 = vrot.lane.b32.xlu0 %v223_v21, %s1822_s10  ;;  %v1599_v22 = vpop.f32.mrb[3].mxu0  ;;  %1609 = vmatprep.subr.msk.mxu0 %vm302_vm4, %v223_v21 }
  0xf9   :  { %1610 = vmatpush3.xpose.msk.msra.mxu0 %vm302_vm4, %v223_v21  ;;  %v537_v23 = vld [vmem:[#allocation2 + $0x8] sm:$0xff] }
  0xfa   :  { %542 = vrot.lane.b32.xlu1 %v537_v23, %s1822_s10  ;;  %v300_v24 = vld [vmem:[#allocation2] sm:$0xff]  ;;  %1614 = vmatprep.subr.mxu0 %v1955_v25 }
  0xfb   :  { %1611 = vmatprep.mubr.msk.f32.mxu0 %vm302_vm4, %v300_v24 }
  0xfc   :  { %540 = vrot.lane.b32.xlu0 %v300_v24, %s1822_s10  ;;  %1612 = vmatmul.mubr.msk.f32.vlgmr.msra.gmra.mrb[4].mxu0 %vm302_vm4, %v537_v23 }
  0xfd   :  { %1615 = vmatpush3.msra.mxu0 %v1955_v25 }
  0xfe   :  { %796 = vrot.lane.b32.xlu1 %v223_v21, %s1823_s4 }
 0x100   :  { %792 = vrot.lane.b32.xlu0 %v300_v24, %s1823_s4 }
 0x102   :  { %794 = vrot.lane.b32.xlu1 %v537_v23, %s1823_s4 }
 0x104   :  { %1047 = vrot.lane.b32.xlu0 %v223_v21, %s1824_s11 }
 0x106   :  { %1043 = vrot.lane.b32.xlu1 %v300_v24, %s1824_s11 }
 0x108   :  { %1045 = vrot.lane.b32.xlu0 %v537_v23, %s1824_s11 }
 0x16a   :  { %v545_v27 = vpop.permute.xlu0 %544 }
 0x16b   :  { %1619 = vmatprep.subr.msk.mxu1 %vm302_vm4, %v545_v27 }
 0x16c   :  { %v543_v28 = vpop.permute.xlu1 %542  ;;  %1620 = vmatpush3.xpose.msk.msra.mxu1 %vm302_vm4, %v545_v27 }
 0x16e   :  { %v541_v29 = vpop.permute.xlu0 %540 }
 0x16f   :  { %1621 = vmatprep.mubr.msk.f32.mxu1 %vm302_vm4, %v541_v29 }
 0x170   :  { %v797_v30 = vpop.permute.xlu1 %796  ;;  %1622 = vmatmul.mubr.msk.f32.vlgmr.msra.gmra.mrb[2].mxu1 %vm302_vm4, %v543_v28 }
 0x171   :  { %1629 = vmatprep.subr.msk.mxu1 %vm302_vm4, %v797_v30 }
 0x172   :  { %1630 = vmatpush3.xpose.msk.msra.mxu1 %vm302_vm4, %v797_v30  ;;  %v793_v31 = vpop.permute.xlu0 %792  ;;  %v1829_v30 = vmov 3  }
 0x173   :  { %1631 = vmatprep.mubr.msk.f32.mxu1 %vm302_vm4, %v793_v31 }
 0x174   :  { %v795_v32 = vpop.permute.xlu1 %794 }
 0x175   :  { %1632 = vmatmul.mubr.msk.f32.vlgmr.msra.gmra.mrb[4].mxu1 %vm302_vm4, %v795_v32 }
 0x176   :  { %v1048_v33 = vpop.permute.xlu0 %1047 }
 0x177   :  { %1639 = vmatprep.subr.msk.mxu1 %vm302_vm4, %v1048_v33 }
 0x178   :  { %v1044_v34 = vpop.permute.xlu1 %1043  ;;  %1640 = vmatpush3.xpose.msk.msra.mxu1 %vm302_vm4, %v1048_v33 }
 0x179   :  { %1641 = vmatprep.mubr.msk.f32.mxu1 %vm302_vm4, %v1044_v34 }
 0x17a   :  { %v1046_v35 = vpop.permute.xlu0 %1045 }
 0x17b   :  { %1642 = vmatmul.mubr.msk.f32.vlgmr.msra.gmra.mrb[6].mxu1 %vm302_vm4, %v1046_v35 }
 0x1cf   :  { %v1971_v36 = vpop.f32.mrb[4].mxu0 }
 0x1d0   :  { %v1973_v37 = vpop.f32.mrb[5].mxu0  ;;  %v393_v38 = vsel %vm389_vm5, %v1971_v36, -inf }
 0x1d1   :  { %394 = vmax.xlane.f32.xlu0 %v393_v38  ;;  %v390_v39 = vsel %vm389_vm5, %v1973_v37, -inf }
 0x1d2   :  { %391 = vmax.xlane.f32.xlu1 %v390_v39 }
 0x243   :  { %v1983_v42 = vpop.f32.mrb[2].mxu1 }
 0x244   :  { %v1985_v43 = vpop.f32.mrb[3].mxu1  ;;  %v632_v44 = vsel %vm389_vm5, %v1983_v42, -inf }
 0x245   :  { %633 = vmax.xlane.f32.xlu1 %v632_v44  ;;  %v629_v45 = vsel %vm389_vm5, %v1985_v43, -inf }
 0x246   :  { %630 = vmax.xlane.f32.xlu0 %v629_v45 }
 0x248   :  { %v1991_v46 = vpop.f32.mrb[4].mxu1 }
 0x249   :  { %v1993_v47 = vpop.f32.mrb[5].mxu1  ;;  %v884_v48 = vsel %vm389_vm5, %v1991_v46, -inf }
 0x24a   :  { %885 = vmax.xlane.f32.xlu1 %v884_v48  ;;  %v881_v49 = vsel %vm389_vm5, %v1993_v47, -inf }
 0x24b   :  { %882 = vmax.xlane.f32.xlu0 %v881_v49 }
 0x24e   :  { %v1999_v50 = vpop.f32.mrb[6].mxu1 }
 0x24f   :  { %v2001_v51 = vpop.f32.mrb[7].mxu1  ;;  %v1135_v52 = vsel %vm389_vm5, %v1999_v50, -inf }
 0x250   :  { %1136 = vmax.xlane.f32.xlu1 %v1135_v52  ;;  %v1132_v53 = vsel %vm389_vm5, %v2001_v51, -inf }
 0x251   :  { %1133 = vmax.xlane.f32.xlu0 %v1132_v53 }
 0x25e   :  { %v395_v56 = vpop.xlane.xlu0 %394 }
 0x25f   :  { %v2012_v57 = vmax.f32 %v2007_v54, %v395_v56  ;;  %v392_v58 = vpop.xlane.xlu1 %391 }
 0x260   :  { %v2015_v59 = vmax.f32 %v2009_v55, %v392_v58 }
 0x261   :  { %v399_v60 = vsub.f32 %v2007_v54, %v2012_v57  ;;  %535 = vst.msk [vmem:[#allocation3 + $0x8] sm:$0xff] %vm432_vm7, %v2012_v57  ;;  %411 = vperm.xlu1 %1717, %v2012_v57   ;;  %v421_v54 = vld [vmem:[#allocation4 + $0x8] sm:$0xff] }
 0x262   :  { %v398_v61 = vsub.f32 %v2009_v55, %v2015_v59  ;;  %534 = vst.msk [vmem:[#allocation3] sm:$0xff] %vm432_vm7, %v2015_v59 }
 0x265   :  { %1718 = vset.pattern.permute.xlu1 %v1827_v62 }
 0x267   :  { %406 = vperm.xlu0 %1716, %v2015_v59  }
 0x268   :  { %v2030_v63 = vld [vmem:[#allocation3 + $0x8] sm:$0xff] }
 0x269   :  { %v2035_v3 = vld [vmem:[#allocation3] sm:$0xff] }
 0x26b   :  { %940 = vrot.lane.b32.xlu0 %v1955_v25, %s1823_s4 }
 0x2d2   :  { %v634_v0 = vpop.xlane.xlu1 %633 }
 0x2d3   :  { %v2033_v1 = vmax.f32 %v2030_v63, %v634_v0  ;;  %v631_v2 = vpop.xlane.xlu0 %630 }
 0x2d4   :  { %v2038_v4 = vmax.f32 %v2035_v3, %v631_v2 }
 0x2d5   :  { %v638_v5 = vsub.f32 %v2030_v63, %v2033_v1  ;;  %787 = vst.msk [vmem:[#allocation3 + $0x8] sm:$0xff] %vm671_vm8, %v2033_v1 }
 0x2d6   :  { %v637_v6 = vsub.f32 %v2035_v3, %v2038_v4  ;;  %786 = vst.msk [vmem:[#allocation3] sm:$0xff] %vm671_vm8, %v2038_v4  ;;  %645 = vperm.xlu1 %1718, %v2038_v4  }
 0x2d7   :  { %v886_v7 = vpop.xlane.xlu1 %885 }
 0x2d8   :  { %v883_v10 = vpop.xlane.xlu0 %882 }
 0x2da   :  { %650 = vperm.xlu1 %1718, %v2033_v1  }
 0x2dc   :  { %v2050_v8 = vld [vmem:[#allocation3 + $0x8] sm:$0xff] }
 0x2dd   :  { %v2053_v9 = vmax.f32 %v2050_v8, %v886_v7  ;;  %v2055_v11 = vld [vmem:[#allocation3] sm:$0xff]  ;;  %v1137_v12 = vpop.xlane.xlu1 %1136 }
 0x2de   :  { %v2058_v13 = vmax.f32 %v2055_v11, %v883_v10  ;;  %1719 = vset.pattern.permute.xlu1 %v1828_v14  ;;  %v1134_v18 = vpop.xlane.xlu0 %1133 }
 0x2df   :  { %v890_v15 = vsub.f32 %v2050_v8, %v2053_v9  ;;  %1038 = vst.msk [vmem:[#allocation3 + $0x8] sm:$0xff] %vm923_vm9, %v2053_v9 }
 0x2e0   :  { %v889_v16 = vsub.f32 %v2055_v11, %v2058_v13  ;;  %1037 = vst.msk [vmem:[#allocation3] sm:$0xff] %vm923_vm9, %v2058_v13  ;;  %897 = vperm.xlu1 %1719, %v2058_v13  }
 0x2e1   :  { %v412_v17 = vpop.permute.xlu1 %411 }
 0x2e2   :  { %v415_v19 = vsub.f32 %v1971_v36, %v412_v17 }
 0x2e4   :  { %902 = vperm.xlu1 %1719, %v2053_v9   ;;  %v418_v27 = vmul.f32 1.442695, %v415_v19 }
 0x2e6   :  { %v2072_v20 = vld [vmem:[#allocation3 + $0x8] sm:$0xff]  ;;  %v407_v21 = vpop.permute.xlu0 %406 }
 0x2e7   :  { %v2075_v22 = vmax.f32 %v2072_v20, %v1137_v12  ;;  %v2077_v23 = vld [vmem:[#allocation3] sm:$0xff]  ;;  %v414_v24 = vsub.f32 %v1973_v37, %v407_v21  ;;  %v400_v21 = vmul.f32 1.442695, %v398_v61  ;;  %v420_v61 = vld [vmem:[#allocation4] sm:$0xff] }
 0x2e8   :  { %v2081_v26 = vmax.f32 %v2077_v23, %v1134_v18  ;;  %689 = vrot.lane.b32.xlu1 %v1955_v25, %s1822_s10 }
 0x2e9   :  { %v1141_v28 = vsub.f32 %v2072_v20, %v2075_v22  ;;  %1289 = vst.msk [vmem:[#allocation3 + $0x8] sm:$0xff] %vm1174_vm10, %v2075_v22  ;;  %v416_v29 = vmul.f32 1.442695, %v414_v24  ;;  %1720 = vset.pattern.permute.xlu1 %v1829_v30 }
 0x2ea   :  { %v1140_v31 = vsub.f32 %v2077_v23, %v2081_v26  ;;  %1288 = vst.msk [vmem:[#allocation3] sm:$0xff] %vm1174_vm10, %v2081_v26 }
 0x2eb   :  { %1734 = vpow2.f32 %v416_v29  ;;  %v1144_v9 = vmul.f32 1.442695, %v1141_v28 }
 0x2ec   :  { %1736 = vpow2.f32 %v418_v27  ;;  %1148 = vperm.xlu1 %1720, %v2081_v26   ;;  %v1142_v11 = vmul.f32 1.442695, %v1140_v31 }
 0x2f0   :  { %1153 = vperm.xlu1 %1720, %v2075_v22  }
 0x2f4   :  { %1191 = vrot.lane.b32.xlu1 %v1955_v25, %s1824_s11 }
 0x2f5   :  { %v1735_v32 = vpop.eup %1734  ;;  %1721 = vset.pattern.permute.xlu1 %v1826_v41 }
 0x2f6   :  { %v1737_v33 = vpop.eup %1736  ;;  %1616 = vmatprep.mubr.msk.f32.mxu0 %vm389_vm5, %v1735_v32  ;;  %v424_v34 = vsel %vm389_vm5, %v1735_v32, 0.0 }
 0x2f7   :  { %425 = vadd.xlane.f32.xlu0 %v424_v34  ;;  %1617 = vmatmul.mubr.msk.f32.vlgmr.msra.gmra.mrb[6].mxu0 %vm389_vm5, %v1737_v33  ;;  %v427_v35 = vsel %vm389_vm5, %v1737_v33, 0.0  ;;  %v639_v33 = vmul.f32 1.442695, %v637_v6  ;;  %v891_v6 = vmul.f32 1.442695, %v889_v16 }
 0x318   :  { %428 = vadd.xlane.f32.xlu1 %v427_v35 }
 0x355   :  { %v646_v36 = vpop.permute.xlu1 %645 }
 0x356   :  { %v653_v37 = vsub.f32 %v1985_v43, %v646_v36 }
 0x358   :  { %v655_v38 = vmul.f32 1.442695, %v653_v37  ;;  %v402_v37 = vmul.f32 1.442695, %v399_v60 }
 0x359   :  { %v651_v39 = vpop.permute.xlu1 %650 }
 0x35a   :  { %1738 = vpow2.f32 %v655_v38  ;;  %v654_v25 = vsub.f32 %v1983_v42, %v651_v39  ;;  %v641_v38 = vmul.f32 1.442695, %v638_v5 }
 0x35c   :  { %v657_v40 = vmul.f32 1.442695, %v654_v25 }
 0x35e   :  { %1740 = vpow2.f32 %v657_v40 }
 0x35f   :  { %v898_v44 = vpop.permute.xlu1 %897 }
 0x360   :  { %v905_v45 = vsub.f32 %v1993_v47, %v898_v44  ;;  %v941_v47 = vpop.permute.xlu0 %940  ;;  %v893_v44 = vmul.f32 1.442695, %v890_v15 }
 0x362   :  { %v907_v48 = vmul.f32 1.442695, %v905_v45 }
 0x363   :  { %v903_v49 = vpop.permute.xlu1 %902 }
 0x364   :  { %v1739_v52 = vpop.eup %1738  ;;  %1742 = vpow2.f32 %v907_v48  ;;  %v906_v53 = vsub.f32 %v1991_v46, %v903_v49 }
 0x365   :  { %1626 = vmatprep.mubr.msk.f32.mxu0 %vm389_vm5, %v1739_v52  ;;  %v663_v43 = vsel %vm389_vm5, %v1739_v52, 0.0 }
 0x366   :  { %v909_v56 = vmul.f32 1.442695, %v906_v53  ;;  %664 = vadd.xlane.f32.xlu0 %v663_v43 }
 0x367   :  { %v690_v58 = vpop.permute.xlu1 %689 }
 0x368   :  { %v1741_v0 = vpop.eup %1740  ;;  %1744 = vpow2.f32 %v909_v56  ;;  %1624 = vmatprep.subr.mxu0 %v690_v58 }
 0x369   :  { %1625 = vmatpush3.msra.mxu0 %v690_v58  ;;  %v666_v42 = vsel %vm389_vm5, %v1741_v0, 0.0 }
 0x36a   :  { %667 = vadd.xlane.f32.xlu0 %v666_v42  ;;  %1627 = vmatmul.mubr.msk.f32.vlgmr.msra.gmra.mrb[8].mxu0 %vm389_vm5, %v1741_v0 }
 0x36b   :  { %1634 = vmatprep.subr.mxu0 %v941_v47  ;;  %v1149_v2 = vpop.permute.xlu1 %1148 }
 0x36c   :  { %1635 = vmatpush3.msra.mxu0 %v941_v47  ;;  %v1156_v46 = vsub.f32 %v2001_v51, %v1149_v2 }
 0x36e   :  { %v1743_v7 = vpop.eup %1742  ;;  %v1158_v10 = vmul.f32 1.442695, %v1156_v46 }
 0x36f   :  { %1636 = vmatprep.mubr.msk.f32.mxu0 %vm389_vm5, %v1743_v7  ;;  %v1154_v12 = vpop.permute.xlu1 %1153  ;;  %v915_v17 = vsel %vm389_vm5, %v1743_v7, 0.0  ;;  %v435_v7 = vld [vmem:[#allocation5] sm:$0xff] }
 0x370   :  { %1746 = vpow2.f32 %v1158_v10  ;;  %v1157_v18 = vsub.f32 %v1999_v50, %v1154_v12  ;;  %916 = vadd.xlane.f32.xlu1 %v915_v17 }
 0x372   :  { %v1745_v19 = vpop.eup %1744  ;;  %v1160_v24 = vmul.f32 1.442695, %v1157_v18 }
 0x373   :  { %1637 = vmatmul.mubr.msk.f32.vlgmr.msra.gmra.mrb[10].mxu0 %vm389_vm5, %v1745_v19  ;;  %v1192_v51 = vpop.permute.xlu1 %1191  ;;  %v918_v27 = vsel %vm389_vm5, %v1745_v19, 0.0 }
 0x374   :  { %1748 = vpow2.f32 %v1160_v24  ;;  %919 = vadd.xlane.f32.xlu0 %v918_v27  ;;  %1644 = vmatprep.subr.mxu0 %v1192_v51  ;;  %v436_v24 = vld [vmem:[#allocation5 + $0x8] sm:$0xff] }
 0x375   :  { %1645 = vmatpush3.msra.mxu0 %v1192_v51  ;;  %1750 = vpow2.f32 %v400_v21 }
 0x376   :  { %1752 = vpow2.f32 %v639_v33 }
 0x377   :  { %1754 = vpow2.f32 %v402_v37 }
 0x378   :  { %1756 = vpow2.f32 %v641_v38  ;;  %v1374_v38 = vld [vmem:[%s2231_s5 + $0x8] sm:$0xff] }
 0x379   :  { %1758 = vpow2.f32 %v891_v6 }
 0x37a   :  { %v1747_v29 = vpop.eup %1746  ;;  %1760 = vpow2.f32 %v893_v44 }
 0x37b   :  { %1646 = vmatprep.mubr.msk.f32.mxu0 %vm389_vm5, %v1747_v29  ;;  %v1166_v50 = vsel %vm389_vm5, %v1747_v29, 0.0  ;;  %1762 = vpow2.f32 %v1142_v11 }
 0x37c   :  { %1167 = vadd.xlane.f32.xlu1 %v1166_v50  ;;  %1764 = vpow2.f32 %v1144_v9 }
 0x37e   :  { %v1749_v32 = vpop.eup %1748 }
 0x37f   :  { %1647 = vmatmul.mubr.msk.f32.vlgmr.msra.gmra.mrb[12].mxu0 %vm389_vm5, %v1749_v32  ;;  %v1169_v55 = vsel %vm389_vm5, %v1749_v32, 0.0  ;;  %v1751_v59 = vpop.eup %1750 }
 0x380   :  { %1170 = vadd.xlane.f32.xlu0 %v1169_v55  ;;  %v422_v34 = vmul.f32 %v1751_v59, %v420_v61  ;;  %v1753_v39 = vpop.eup %1752 }
 0x381   :  { %v1755_v3 = vpop.eup %1754 }
 0x382   :  { %v1757_v4 = vpop.eup %1756  ;;  %v423_v57 = vmul.f32 %v1755_v3, %v421_v54 }
 0x383   :  { %v1759_v13 = vpop.eup %1758 }
 0x384   :  { %v426_v35 = vpop.xlane.xlu0 %425  ;;  %v1761_v58 = vpop.eup %1760 }
 0x385   :  { %v430_v36 = vadd.f32 %v426_v35, %v422_v34  ;;  %v1763_v23 = vpop.eup %1762 }
 0x386   :  { %v1765_v22 = vpop.eup %1764 }
 0x387   :  { %433 = vst.msk [vmem:[#allocation4] sm:$0xff] %vm432_vm7, %v430_v36 }
 0x38d   :  { %439 = vperm.xlu1 %1721, %v1751_v59  }
 0x38e   :  { %v659_v25 = vld [vmem:[#allocation4] sm:$0xff] }
 0x38f   :  { %v661_v40 = vmul.f32 %v1753_v39, %v659_v25 }
 0x391   :  { %1722 = vset.pattern.permute.xlu1 %v1827_v62 }
 0x392   :  { %678 = vperm.xlu1 %1722, %v1753_v39  }
 0x396   :  { %683 = vperm.xlu1 %1722, %v1757_v4   ;;  %444 = vperm.xlu0 %1716, %v1755_v3   ;;  %v1377_v3 = vld [vmem:[%s2231_s5 + $0x20] sm:$0xff] }
 0x39a   :  { %1724 = vset.pattern.permute.xlu1 %v1828_v14  ;;  %1723 = vset.pattern.permute.xlu0 %v1828_v14 }
 0x3a5   :  { %v429_v60 = vpop.xlane.xlu1 %428 }
 0x3a6   :  { %v431_v63 = vadd.f32 %v429_v60, %v423_v57  ;;  %v1379_v57 = vld [vmem:[%s2231_s5 + $0x30] sm:$0xff]  ;;  %v1380_v60 = vld [vmem:[%s2231_s5 + $0x38] sm:$0xff] }
 0x3a8   :  { %434 = vst.msk [vmem:[#allocation4 + $0x8] sm:$0xff] %vm432_vm7, %v431_v63  ;;  %v1694_v63 = vpack.c.bf16 %v1380_v60, %v1379_v57  ;;  %v1531_v60 = vld [vmem:[%s2232_s6] ss:$0 sm:$0xff] }
 0x3af   :  { %v660_v48 = vld [vmem:[#allocation4 + $0x8] sm:$0xff] }
 0x3b0   :  { %v662_v52 = vmul.f32 %v1757_v4, %v660_v48  ;;  %v1378_v4 = vld [vmem:[%s2231_s5 + $0x28] sm:$0xff] }
 0x3b1   :  { %v1690_v54 = vpack.c.bf16 %v1378_v4, %v1377_v3 }
 0x3ca   :  { %v1618_v1 = vpop.f32.mrb[6].mxu0 }
 0x3cb   :  { %v521_v5 = vpop.f32.mrb[7].mxu0 }
 0x3f3   :  { %v665_v45 = vpop.xlane.xlu0 %664 }
 0x3f4   :  { %v669_v49 = vadd.f32 %v665_v45, %v661_v40 }
 0x3f6   :  { %672 = vst.msk [vmem:[#allocation4] sm:$0xff] %vm671_vm8, %v669_v49 }
 0x3f7   :  { %v668_v53 = vpop.xlane.xlu0 %667 }
 0x3f8   :  { %v670_v43 = vadd.f32 %v668_v53, %v662_v52 }
 0x3fa   :  { %673 = vst.msk [vmem:[#allocation4 + $0x8] sm:$0xff] %vm671_vm8, %v670_v43 }
 0x3fd   :  { %v911_v16 = vld [vmem:[#allocation4] sm:$0xff]  ;;  %v917_v15 = vpop.xlane.xlu1 %916 }
 0x3fe   :  { %v913_v8 = vmul.f32 %v1759_v13, %v911_v16 }
 0x400   :  { %v921_v56 = vadd.f32 %v917_v15, %v913_v8 }
 0x401   :  { %v912_v0 = vld [vmem:[#allocation4 + $0x8] sm:$0xff]  ;;  %v920_v47 = vpop.xlane.xlu0 %919 }
 0x402   :  { %924 = vst.msk [vmem:[#allocation4] sm:$0xff] %vm923_vm9, %v921_v56  ;;  %v914_v42 = vmul.f32 %v1761_v58, %v912_v0 }
 0x404   :  { %v922_v2 = vadd.f32 %v920_v47, %v914_v42 }
 0x406   :  { %925 = vst.msk [vmem:[#allocation4 + $0x8] sm:$0xff] %vm923_vm9, %v922_v2 }
 0x409   :  { %v1162_v26 = vld [vmem:[#allocation4] sm:$0xff]  ;;  %v1168_v31 = vpop.xlane.xlu1 %1167 }
 0x40a   :  { %v1164_v46 = vmul.f32 %v1763_v23, %v1162_v26 }
 0x40c   :  { %v1172_v20 = vadd.f32 %v1168_v31, %v1164_v46 }
 0x40d   :  { %v1163_v28 = vld [vmem:[#allocation4 + $0x8] sm:$0xff]  ;;  %v440_v10 = vpop.permute.xlu1 %439  ;;  %v1171_v18 = vpop.xlane.xlu0 %1170 }
 0x40e   :  { %1175 = vst.msk [vmem:[#allocation4] sm:$0xff] %vm1174_vm10, %v1172_v20  ;;  %v1165_v12 = vmul.f32 %v1765_v22, %v1163_v28  ;;  %v447_v17 = vmul.f32 %v440_v10, %v435_v7 }
 0x410   :  { %v1173_v19 = vadd.f32 %v1171_v18, %v1165_v12  ;;  %v530_v21 = vadd.f32 %v521_v5, %v447_v17 }
 0x412   :  { %1176 = vst.msk [vmem:[#allocation4 + $0x8] sm:$0xff] %vm1174_vm10, %v1173_v19 }
 0x413   :  { %532 = vst.msk [vmem:[#allocation5] sm:$0xff] %vm302_vm4, %v530_v21 }
 0x415   :  { %v445_v51 = vpop.permute.xlu0 %444  ;;  %v1293_v55 = vld [vmem:[#allocation4] sm:$0xff] }
 0x416   :  { %v448_v27 = vmul.f32 %v445_v51, %v436_v24  ;;  %1766 = vrcp.f32 %v1293_v55 }
 0x418   :  { %v531_v29 = vadd.f32 %v1618_v1, %v448_v27  ;;  %v679_v1 = vpop.permute.xlu1 %678 }
 0x419   :  { %v1314_v33 = vld [vmem:[#allocation4 + $0x8] sm:$0xff] }
 0x41a   :  { %533 = vst.msk [vmem:[#allocation5 + $0x8] sm:$0xff] %vm302_vm4, %v531_v29  ;;  %1768 = vrcp.f32 %v1314_v33  ;;  %v674_v25 = vld [vmem:[#allocation5] sm:$0xff] }
 0x41b   :  { %v686_v44 = vmul.f32 %v679_v1, %v674_v25 }
 0x41c   :  { %v684_v6 = vpop.permute.xlu1 %683 }
 0x420   :  { %v1767_v34 = vpop.eup %1766 }
 0x421   :  { %v675_v5 = vld [vmem:[#allocation5 + $0x8] sm:$0xff] }
 0x422   :  { %v687_v40 = vmul.f32 %v684_v6, %v675_v5 }
 0x424   :  { %v1769_v37 = vpop.eup %1768 }
 0x43d   :  { %v1628_v50 = vpop.f32.mrb[8].mxu0 }
 0x43e   :  { %v764_v32 = vpop.f32.mrb[9].mxu0  ;;  %777 = vrot.lane.b32.xlu1 %v1628_v50, %s1830_s12 }
 0x43f   :  { %775 = vrot.lane.b32.xlu0 %v764_v32, %s1830_s12 }
 0x442   :  { %935 = vperm.xlu1 %1724, %v1761_v58  }
 0x443   :  { %930 = vperm.xlu0 %1723, %v1759_v13  }
 0x446   :  { %v1638_v59 = vpop.f32.mrb[10].mxu0  ;;  %1725 = vset.pattern.permute.xlu1 %v1829_v30 }
 0x447   :  { %v1015_v61 = vpop.f32.mrb[11].mxu0  ;;  %1028 = vrot.lane.b32.xlu0 %v1638_v59, %s1831_s13 }
 0x448   :  { %1026 = vrot.lane.b32.xlu1 %v1015_v61, %s1831_s13  ;;  %1726 = vset.pattern.permute.xlu0 %v1829_v30 }
 0x44b   :  { %1186 = vperm.xlu0 %1726, %v1765_v22  }
 0x44c   :  { %1181 = vperm.xlu1 %1725, %v1763_v23  }
 0x44f   :  { %1727 = vset.pattern.permute.xlu0 %v1826_v41 }
 0x450   :  { %1301 = vperm.xlu0 %1727, %v1767_v34   ;;  %1728 = vset.pattern.permute.xlu1 %v1826_v41  ;;  %v1373_v41 = vld [vmem:[%s2231_s5] sm:$0xff] }
 0x451   :  { %v1682_v39 = vpack.c.bf16 %v1374_v38, %v1373_v41 }
 0x452   :  { %v1648_v35 = vpop.f32.mrb[12].mxu0 }
 0x453   :  { %1279 = vrot.lane.b32.xlu1 %v1648_v35, %s1832_s14  ;;  %v1266_v36 = vpop.f32.mrb[13].mxu0  ;;  %1683 = vmatprep.subr.bf16.mxu1 %v1682_v39 }
 0x454   :  { %1730 = vset.pattern.permute.xlu0 %v1827_v62  ;;  %1685 = vmatpush3.bf16.msra.mxu1 %v1682_v39 }
 0x455   :  { %1326 = vperm.xlu0 %1730, %v1769_v37  }
 0x457   :  { %1277 = vrot.lane.b32.xlu1 %v1266_v36, %s1832_s14 }
 0x459   :  { %1732 = vset.pattern.permute.xlu0 %v1829_v30 }
 0x45a   :  { %1361 = vperm.xlu0 %1732, %v1767_v34  }
 0x45b   :  { %1306 = vperm.xlu1 %1728, %v1769_v37  }
 0x45f   :  { %1729 = vset.pattern.permute.xlu1 %v1827_v62  ;;  %v1375_v62 = vld [vmem:[%s2231_s5 + $0x10] sm:$0xff] }
 0x460   :  { %1321 = vperm.xlu1 %1729, %v1767_v34  }
 0x464   :  { %1731 = vset.pattern.permute.xlu1 %v1828_v14  ;;  %v1376_v14 = vld [vmem:[%s2231_s5 + $0x18] sm:$0xff] }
 0x465   :  { %1341 = vperm.xlu1 %1731, %v1767_v34  }
 0x469   :  { %1346 = vperm.xlu1 %1731, %v1769_v37  }
 0x46d   :  { %1733 = vset.pattern.permute.xlu1 %v1829_v30  ;;  %v1686_v30 = vpack.c.bf16 %v1376_v14, %v1375_v62  ;;  %v1382_v14 = vld [vmem:[#allocation6 + $0x8] sm:$0xff] }
 0x46e   :  { %1366 = vperm.xlu1 %1733, %v1769_v37  }
 0x46f   :  { %1687 = vmatprep.subr.bf16.mxu1 %v1686_v30 }
 0x470   :  { %1689 = vmatpush3.bf16.msra.mxu1 %v1686_v30  ;;  %v1381_v30 = vld [vmem:[#allocation6] sm:$0xff] }
 0x471   :  { %1691 = vmatprep.subr.bf16.mxu1 %v1690_v54 }
 0x474   :  { %1693 = vmatpush3.bf16.msra.mxu1 %v1690_v54 }
 0x475   :  { %1695 = vmatprep.subr.bf16.mxu1 %v1694_v63 }
 0x478   :  { %1697 = vmatpush3.bf16.msra.mxu1 %v1694_v63 }
 0x4b0   :  { %v778_v45 = vpop.permute.xlu1 %777 }
 0x4b1   :  { %v782_v48 = vadd.f32 %v778_v45, %v687_v40  ;;  %v776_v49 = vpop.permute.xlu0 %775 }
 0x4b2   :  { %v781_v52 = vadd.f32 %v776_v49, %v686_v44 }
 0x4b3   :  { %785 = vst.msk [vmem:[#allocation5 + $0x8] sm:$0xff] %vm783_vm11, %v782_v48 }
 0x4b4   :  { %784 = vst.msk [vmem:[#allocation5] sm:$0xff] %vm783_vm11, %v781_v52 }
 0x4ba   :  { %v927_v16 = vld [vmem:[#allocation5 + $0x8] sm:$0xff] }
 0x4bb   :  { %v926_v11 = vld [vmem:[#allocation5] sm:$0xff] }
 0x4c1   :  { %v936_v53 = vpop.permute.xlu1 %935 }
 0x4c2   :  { %v931_v43 = vpop.permute.xlu0 %930  ;;  %v939_v8 = vmul.f32 %v936_v53, %v927_v16 }
 0x4c3   :  { %v938_v13 = vmul.f32 %v931_v43, %v926_v11 }
 0x4c5   :  { %v1027_v9 = vpop.permute.xlu1 %1026 }
 0x4c6   :  { %v1032_v15 = vadd.f32 %v1027_v9, %v938_v13  ;;  %v1029_v56 = vpop.permute.xlu0 %1028 }
 0x4c7   :  { %v1033_v58 = vadd.f32 %v1029_v56, %v939_v8 }
 0x4c8   :  { %1035 = vst.msk [vmem:[#allocation5] sm:$0xff] %vm1034_vm12, %v1032_v15 }
 0x4c9   :  { %1036 = vst.msk [vmem:[#allocation5 + $0x8] sm:$0xff] %vm1034_vm12, %v1033_v58 }
 0x4ca   :  { %v1187_v2 = vpop.permute.xlu0 %1186 }
 0x4cb   :  { %v1182_v0 = vpop.permute.xlu1 %1181 }
 0x4cf   :  { %v1177_v42 = vld [vmem:[#allocation5] sm:$0xff]  ;;  %v1280_v47 = vpop.permute.xlu1 %1279  ;;  %v1302_v10 = vpop.permute.xlu0 %1301 }
 0x4d0   :  { %v1178_v23 = vld [vmem:[#allocation5 + $0x8] sm:$0xff]  ;;  %v1189_v31 = vmul.f32 %v1182_v0, %v1177_v42 }
 0x4d1   :  { %v1190_v26 = vmul.f32 %v1187_v2, %v1178_v23 }
 0x4d3   :  { %v1284_v46 = vadd.f32 %v1280_v47, %v1190_v26  ;;  %v1278_v7 = vpop.permute.xlu1 %1277 }
 0x4d4   :  { %v1283_v20 = vadd.f32 %v1278_v7, %v1189_v31  ;;  %v1327_v21 = vpop.permute.xlu0 %1326 }
 0x4d5   :  { %1287 = vst.msk [vmem:[#allocation5 + $0x8] sm:$0xff] %vm1285_vm13, %v1284_v46 }
 0x4d6   :  { %1286 = vst.msk [vmem:[#allocation5] sm:$0xff] %vm1285_vm13, %v1283_v20 }
 0x4d9   :  { %v1362_v36 = vpop.permute.xlu0 %1361 }
 0x4da   :  { %v1307_v28 = vpop.permute.xlu1 %1306 }
 0x4dc   :  { %v1298_v22 = vld [vmem:[#allocation5 + $0x8] sm:$0xff] }
 0x4dd   :  { %v1310_v12 = vmul.f32 %v1307_v28, %v1298_v22  ;;  %v1297_v17 = vld [vmem:[#allocation5] sm:$0xff] }
 0x4de   :  { %v1309_v18 = vmul.f32 %v1302_v10, %v1297_v17 }
 0x4df   :  { %1312 = vst.msk [vmem:[#allocation5 + $0x8] sm:$0xff] %vm302_vm4, %v1310_v12  ;;  %v1322_v19 = vpop.permute.xlu1 %1321 }
 0x4e0   :  { %1311 = vst.msk [vmem:[#allocation5] sm:$0xff] %vm302_vm4, %v1309_v18 }
 0x4e4   :  { %v1342_v50 = vpop.permute.xlu1 %1341 }
 0x4e6   :  { %v1318_v24 = vld [vmem:[#allocation5 + $0x8] sm:$0xff] }
 0x4e7   :  { %v1317_v51 = vld [vmem:[#allocation5] sm:$0xff]  ;;  %v1330_v27 = vmul.f32 %v1327_v21, %v1318_v24 }
 0x4e8   :  { %v1329_v29 = vmul.f32 %v1322_v19, %v1317_v51  ;;  %v1347_v55 = vpop.permute.xlu1 %1346 }
 0x4e9   :  { %1332 = vst.msk [vmem:[#allocation5 + $0x8] sm:$0xff] %vm783_vm11, %v1330_v27 }
 0x4ea   :  { %1331 = vst.msk [vmem:[#allocation5] sm:$0xff] %vm783_vm11, %v1329_v29 }
 0x4ed   :  { %v1367_v35 = vpop.permute.xlu1 %1366 }
 0x4f0   :  { %v1338_v32 = vld [vmem:[#allocation5 + $0x8] sm:$0xff] }
 0x4f1   :  { %v1337_v59 = vld [vmem:[#allocation5] sm:$0xff]  ;;  %v1350_v61 = vmul.f32 %v1347_v55, %v1338_v32 }
 0x4f2   :  { %v1349_v33 = vmul.f32 %v1342_v50, %v1337_v59 }
 0x4f3   :  { %1352 = vst.msk [vmem:[#allocation5 + $0x8] sm:$0xff] %vm1034_vm12, %v1350_v61 }
 0x4f4   :  { %1351 = vst.msk [vmem:[#allocation5] sm:$0xff] %vm1034_vm12, %v1349_v33 }
 0x4fa   :  { %v1358_v34 = vld [vmem:[#allocation5 + $0x8] sm:$0xff] }
 0x4fb   :  { %v1357_v37 = vld [vmem:[#allocation5] sm:$0xff]  ;;  %v1370_v41 = vmul.f32 %v1367_v35, %v1358_v34 }
 0x4fc   :  { %v1369_v38 = vmul.f32 %v1362_v36, %v1357_v37 }
 0x4fd   :  { %1372 = vst.msk [vmem:[#allocation5 + $0x8] sm:$0xff] %vm1285_vm13, %v1370_v41 }
 0x4fe   :  { %1371 = vst.msk [vmem:[#allocation5] sm:$0xff] %vm1285_vm13, %v1369_v38 }
 0x504   :  { %v1384_v62 = vld [vmem:[#allocation5 + $0x8] sm:$0xff] }
 0x505   :  { %v1383_v39 = vld [vmem:[#allocation5] sm:$0xff] }
 0x506   :  { %1665 = vmatprep.mubr.msk.f32.mxu1 %vm139_vm3, %v1383_v39 }
 0x507   :  { %1666 = vmatmul.mubr.msk.f32.vlgmr.msra.gmra.mrb[8].mxu1 %vm139_vm3, %v1384_v62 }
 0x5da   :  { %v1667_v3 = vpop.f32.mrb[8].mxu1 }
 0x5db   :  { %v1468_v4 = vadd.f32 %v1667_v3, %v1382_v14  ;;  %v1458_v54 = vpop.f32.mrb[9].mxu1 }
 0x5dc   :  { %v1467_v57 = vadd.f32 %v1458_v54, %v1381_v30 }
 0x5dd   :  { %1471 = vst.msk [vmem:[#allocation6 + $0x8] sm:$0xff] %vm45_vm0, %v1468_v4 }
 0x5de   :  { %1470 = vst.msk [vmem:[#allocation6] sm:$0xff] %vm45_vm0, %v1467_v57 }
 0x5e4   :  { %v1475_v63 = vld [vmem:[#allocation6 + $0x8] sm:$0xff] }
 0x5e5   :  { %v1474_v1 = vld [vmem:[#allocation6] sm:$0xff]  ;;  %v1484_v5 = vadd.f32 %v1531_v60, %v1475_v63 }
 0x5e6   :  { %v1483_v6 = vadd.f32 %v1531_v60, %v1474_v1 }
 0x5e7   :  { %1487 = vst.msk [vmem:[#allocation10 + $0x8] sm:$0xff] %vm45_vm0, %v1484_v5 }
 0x5e8   :  { %1486 = vst.msk [vmem:[#allocation10] sm:$0xff] %vm45_vm0, %v1483_v6 }
 0x5e9   :  { %1803 = shalt.err (!%p1800_p12)
}
 0x5ea   :  { %s1804_s9 = scalar_lea.hbm %s2233_s7, 256 }
 0x5eb   :  { %p1805_p13 = scmp.ne.s32.totalorder %s2233_s7, %s1804_s9  ;;  %p1808_p0 = scmp.lt.u32.totalorder %s1804_s9, %s2233_s7 }
 0x5ed   :  { %p1810_p1 = pnand %p1808_p0, %p1805_p13 }
 0x5ef   :  { %1813 = shalt.err (!%p1810_p1)
}
 0x5f0   :  { %s1834_s13 = smov 128   ;;  %s1835_s14 = smov 8  }
 0x5f1   :  { %1499 = dma.vmem_to_hbm [thread:$0]  %s1494_s30, 256, %s2233_s7, [#allocation9], %s1834_s13, %s1834_s13, %s1835_s14  }
 0x5f2   :  { %1816 = dma.done.wait [#allocation9], 256  }
 0x5f3   :  { %1817 = vsyncadd [#allocation9], 4294967040 }
 0x5f4   :  { %1503 = vsyncpa [#allocation8], 1 }
 0x5f5   :  { %1504 = vsyncpa [#allocation9], 1 }

</bundles_post_ra>
